<compile_context>
chip_gen: v5e
topology: v5e:2x2
jax: 0.10.0
libtpu: 0.0.40
codegen_flags: <defaults>
</compile_context>

<pallas_src>
import jax
import jax.numpy as jnp
from jax.experimental import pallas as pl
from jax.experimental.pallas import tpu as pltpu

HIDDEN = 64
IN_FEATS = 15
CONTRASTIVE = 8
NEG_SLOPE = 0.2      # GATConv LeakyReLU alpha
LN_EPS = 1e-5

# Packed matrix table [9, 64, 64]:
#   0: w0(pad) 1: w1 2: w2 (lc_encode)   3..5: gw1..gw3   6: wa 7: wb(pad) 8: wc(pad)
_N_MATS = 9
# Packed vector table rows (each [1, 64]):
#   0: b0  1: b1  2: b2  3: ba  4: bb(pad)  5: bc(pad)
#   6 + 5*k + {0: att_src, 1: att_dst, 2: gat_bias, 3: ln_gamma, 4: ln_beta}  (block k)
_N_VEC_ROWS = 6 + 5 * 3           # 21
_VEC_ROWS_PAD = 24                # sublane-friendly


# ----------------------------- in-kernel helpers -----------------------------

def _elu(x):
    return jnp.where(x > 0, x, jnp.exp(jnp.minimum(x, 0.0)) - 1.0)


def _layernorm(x, gamma, beta):
    mu = jnp.mean(x, axis=-1, keepdims=True)
    var = jnp.mean((x - mu) * (x - mu), axis=-1, keepdims=True)
    return (x - mu) * jax.lax.rsqrt(var + LN_EPS) * gamma + beta


def _gat_layer(x, edge_mask, w, att_src, att_dst, bias):
    # x: [N, H]; edge_mask: [N, N] bool (edge_mask[i, j] = True iff edge j -> i, incl. self-loop)
    h = jnp.dot(x, w, preferred_element_type=jnp.float32)                  # [N, H]
    # Both attention projections on the MXU (contract the lane dim).
    a_dst = jax.lax.dot_general(h, att_dst, (((1,), (1,)), ((), ())),
                                preferred_element_type=jnp.float32)        # [N, 1]
    a_src = jax.lax.dot_general(att_src, h, (((1,), (1,)), ((), ())),
                                preferred_element_type=jnp.float32)        # [1, N]
    e = a_dst + a_src                                                      # e[i, j]
    e = jnp.where(e > 0, e, NEG_SLOPE * e)                                 # LeakyReLU
    e = jnp.where(edge_mask, e, -1e30)                                     # mask non-edges
    m = jnp.max(e, axis=-1, keepdims=True)                                 # finite (self-loop)
    p = jnp.exp(e - m)                                                     # non-edges -> exactly 0
    attn = p * pl.reciprocal(jnp.sum(p, axis=-1, keepdims=True), approx=True)
    # attention dropout (p=0.1) is identity at inference
    return jnp.dot(attn, h, preferred_element_type=jnp.float32) + bias


# --------------------------------- kernel ------------------------------------

def net_kernel(x_ref, adj_ref, mats_ref, vecs_ref, out_ref):
    x = x_ref[...]                           # [n_pad, 64] (feature-padded)
    edge_mask = adj_ref[...] > 0             # bf16 mask -> bool

    def vrow(i):                             # [1, 64] static row view of the vector table
        return vecs_ref[pl.ds(i, 1), :]

    def mat(i):                              # [64, 64] slot of the matrix table
        return mats_ref[i]

    # lc_encode
    h = _elu(jnp.dot(x, mat(0), preferred_element_type=jnp.float32) + vrow(0))
    h = _elu(jnp.dot(h, mat(1), preferred_element_type=jnp.float32) + vrow(1))
    h = jnp.dot(h, mat(2), preferred_element_type=jnp.float32) + vrow(2)

    # 3x [GATConv -> residual add -> LayerNorm]; dropout(0.1) is identity in eval mode
    for blk in range(3):
        base = 6 + 5 * blk
        res = h
        f = _gat_layer(h, edge_mask, mat(3 + blk),
                       vrow(base + 0), vrow(base + 1), vrow(base + 2))
        h = _layernorm(f + res, vrow(base + 3), vrow(base + 4))

    # output MLP (dropouts are identity at inference); wb/wc/bb/bc zero-padded to 64 wide,
    # so columns 8..63 of the result are exactly 0 and get sliced off in the wrapper.
    o = _elu(jnp.dot(h, mat(6), preferred_element_type=jnp.float32) + vrow(3))
    o = _elu(jnp.dot(o, mat(7), preferred_element_type=jnp.float32) + vrow(4))
    o = jnp.dot(o, mat(8), preferred_element_type=jnp.float32) + vrow(5)

    out_ref[...] = o


# --------------------------------- wrapper -----------------------------------

def init_params(key):
    def lin(k, fan_in, fan_out):
        scale = 1.0 / jnp.sqrt(jnp.float32(fan_in))
        kw, kb = jax.random.split(k)
        w = jax.random.uniform(kw, (fan_in, fan_out), jnp.float32, -scale, scale)
        b = jax.random.uniform(kb, (1, fan_out), jnp.float32, -scale, scale)
        return w, b

    keys = iter(jax.random.split(key, 32))
    params = []
    # lc_encode
    for fi, fo in ((IN_FEATS, HIDDEN), (HIDDEN, HIDDEN), (HIDDEN, HIDDEN)):
        w, b = lin(next(keys), fi, fo)
        params += [w, b]
    # 3 GAT blocks (+ LayerNorm affine)
    for _ in range(3):
        gw, _ = lin(next(keys), HIDDEN, HIDDEN)                       # lin (bias=False)
        a_src = jax.random.normal(next(keys), (1, HIDDEN), jnp.float32) * 0.1
        a_dst = jax.random.normal(next(keys), (1, HIDDEN), jnp.float32) * 0.1
        g_bias = jnp.zeros((1, HIDDEN), jnp.float32)
        gamma = jnp.ones((1, HIDDEN), jnp.float32)
        beta = jnp.zeros((1, HIDDEN), jnp.float32)
        params += [gw, a_src, a_dst, g_bias, gamma, beta]
    # output MLP
    for fi, fo in ((HIDDEN, 64), (64, 32), (32, CONTRASTIVE)):
        w, b = lin(next(keys), fi, fo)
        params += [w, b]
    return params


def _pad2d(a, shape):
    out = jnp.zeros(shape, jnp.float32)
    return out.at[:a.shape[0], :a.shape[1]].set(a)


def pack_params(params):
    (w0, b0, w1, b1, w2, b2,
     gw1, as1, ad1, gb1, g1, be1,
     gw2, as2, ad2, gb2, g2, be2,
     gw3, as3, ad3, gb3, g3, be3,
     wa, ba, wb, bb, wc, bc) = params
    mats = jnp.stack([_pad2d(w0, (HIDDEN, HIDDEN)), w1, w2,
                      gw1, gw2, gw3,
                      wa, _pad2d(wb, (HIDDEN, HIDDEN)), _pad2d(wc, (HIDDEN, HIDDEN))],
                     axis=0)                                           # [9, 64, 64]
    vecs = jnp.concatenate(
        [b0, b1, b2, ba, _pad2d(bb, (1, HIDDEN)), _pad2d(bc, (1, HIDDEN)),
         as1, ad1, gb1, g1, be1,
         as2, ad2, gb2, g2, be2,
         as3, ad3, gb3, g3, be3], axis=0)                              # [21, 64]
    assert mats.shape == (_N_MATS, HIDDEN, HIDDEN)
    assert vecs.shape == (_N_VEC_ROWS, HIDDEN)
    vecs = jnp.concatenate(
        [vecs, jnp.zeros((_VEC_ROWS_PAD - _N_VEC_ROWS, HIDDEN), jnp.float32)], axis=0)
    return dict(mats=mats, vecs=vecs)


def build_dense_graph(x_lc, edge_index, n_pad):
    """Dense adjacency (target, source) incl. self-loops + feature-padded node matrix."""
    N = x_lc.shape[0]
    adj = jnp.zeros((n_pad, n_pad), jnp.float32)
    adj = adj.at[edge_index[1], edge_index[0]].set(1.0)
    # self-loops for every (incl. padded) node keep the masked softmax finite
    adj = jnp.maximum(adj, jnp.eye(n_pad, dtype=jnp.float32)).astype(jnp.bfloat16)
    x = jnp.zeros((n_pad, HIDDEN), jnp.float32).at[:N, :IN_FEATS].set(
        x_lc.astype(jnp.float32))
    return x, adj


def net_forward_graphs(x_stack, adj_stack, packed):
    """Batched forward: one pallas_call over G graphs (grid axis marked parallel)."""
    G, n_pad, _ = x_stack.shape
    grid_spec = pltpu.PrefetchScalarGridSpec(
        num_scalar_prefetch=0,
        grid=(G,),
        in_specs=[
            pl.BlockSpec((None, n_pad, HIDDEN), lambda g: (g, 0, 0)),         # x (per graph)
            pl.BlockSpec((None, n_pad, n_pad), lambda g: (g, 0, 0)),          # adj (per graph)
            pl.BlockSpec((_N_MATS, HIDDEN, HIDDEN), lambda g: (0, 0, 0)),     # weights: resident
            pl.BlockSpec((_VEC_ROWS_PAD, HIDDEN), lambda g: (0, 0)),          # vectors: resident
        ],
        out_specs=pl.BlockSpec((None, n_pad, HIDDEN), lambda g: (g, 0, 0)),
    )
    return pl.pallas_call(
        net_kernel,
        out_shape=jax.ShapeDtypeStruct((G, n_pad, HIDDEN), jnp.float32),
        grid_spec=grid_spec,
        compiler_params=pltpu.CompilerParams(dimension_semantics=("parallel",)),
    )(x_stack, adj_stack, packed["mats"], packed["vecs"])


def net_forward(x_lc, edge_index, batch_lc, packed):
    """Single-graph API matching Net.forward(x_lc, edge_index, batch_lc)."""
    N = x_lc.shape[0]
    n_pad = max(8, ((N + 7) // 8) * 8)
    x_pad, adj = build_dense_graph(x_lc, edge_index, n_pad)
    out = net_forward_graphs(x_pad[None], adj[None], packed)
    return out[0, :N, :CONTRASTIVE], batch_lc


# ----------------------------------- main ------------------------------------

if __name__ == "__main__":
    key = jax.random.PRNGKey(0)
    k_x, k_e, k_p = jax.random.split(key, 3)

    G = 4            # graphs (tracksters) batched into one pallas_call
    N = 16           # layer clusters (nodes) per graph
    E = 48           # directed edges per graph
    n_pad = max(8, ((N + 7) // 8) * 8)

    params = init_params(k_p)
    packed = pack_params(params)

    x_keys = jax.random.split(k_x, G)
    e_keys = jax.random.split(k_e, G)
    xs, adjs = [], []
    for g in range(G):
        x_g = jax.random.normal(x_keys[g], (N, IN_FEATS), jnp.float32)
        ei_g = jax.random.randint(e_keys[g], (2, E), 0, N, jnp.int32)
        xp, ad = build_dense_graph(x_g, ei_g, n_pad)
        xs.append(xp)
        adjs.append(ad)
    x_stack = jnp.stack(xs)          # [G, n_pad, 64]
    adj_stack = jnp.stack(adjs)      # [G, n_pad, n_pad] bf16

    # Batched throughput path: one kernel launch, weights DMA'd once, grid over graphs.
    out_b = jax.jit(net_forward_graphs)(x_stack, adj_stack, packed)
    jax.block_until_ready(out_b)

    # Single-graph path (reference-like signature).
    x_lc0 = jax.random.normal(x_keys[0], (N, IN_FEATS), jnp.float32)
    edge_index0 = jax.random.randint(e_keys[0], (2, E), 0, N, jnp.int32)
    batch_lc = jnp.zeros((N,), jnp.int32)
    out0, batch_out = jax.jit(net_forward)(x_lc0, edge_index0, batch_lc, packed)
    jax.block_until_ready(out0)
    jax.block_until_ready(batch_out)

    assert out_b.shape == (G, n_pad, HIDDEN)
    assert out0.shape == (N, CONTRASTIVE)
    assert bool(jnp.all(jnp.isfinite(out_b)))
    assert bool(jnp.all(jnp.isfinite(out0)))
    # batched graph 0 must agree with the single-graph path
    assert bool(jnp.allclose(out_b[0, :N, :CONTRASTIVE], out0, atol=1e-5, rtol=1e-5))
    print("KERNEL_OK")
</pallas_src>

<mosaic_0001>
module attributes {stable_mosaic.version = 11 : i64} {
  func.func @net_kernel(%arg0: i32, %arg1: memref<1x16x64xf32, #tpu.memory_space<vmem>>, %arg2: memref<1x16x16xbf16, #tpu.memory_space<vmem>>, %arg3: memref<9x64x64xf32, #tpu.memory_space<vmem>>, %arg4: memref<24x64xf32, #tpu.memory_space<vmem>>, %arg5: memref<1x16x64xf32, #tpu.memory_space<vmem>>) attributes {dimension_semantics = [#tpu.dimension_semantics<parallel>], iteration_bounds = array<i64: 4>, scalar_prefetch = 0 : i64, scratch_operands = 0 : i64, tpu.core_type = #tpu.core_type<tc>, window_params = [{transform_indices = @transform_0, window_bounds = array<i64: 1, 16, 64>}, {transform_indices = @transform_1, window_bounds = array<i64: 1, 16, 16>}, {pipeline_mode = #tpu.pipeline_mode<synchronous>, transform_indices = @transform_2, window_bounds = array<i64: 9, 64, 64>}, {pipeline_mode = #tpu.pipeline_mode<synchronous>, transform_indices = @transform_3, window_bounds = array<i64: 24, 64>}, {transform_indices = @transform_4, window_bounds = array<i64: 1, 16, 64>}]} {
    %c0 = arith.constant 0 : index
    %c0_0 = arith.constant 0 : index
    %c0_1 = arith.constant 0 : index
    %0 = vector.load %arg1[%c0, %c0_0, %c0_1] : memref<1x16x64xf32, #tpu.memory_space<vmem>>, vector<1x16x64xf32>
    %1 = vector.shape_cast %0 : vector<1x16x64xf32> to vector<16x64xf32>
    %c0_2 = arith.constant 0 : index
    %c0_3 = arith.constant 0 : index
    %c0_4 = arith.constant 0 : index
    %2 = vector.load %arg2[%c0_2, %c0_3, %c0_4] : memref<1x16x16xbf16, #tpu.memory_space<vmem>>, vector<1x16x16xbf16>
    %3 = vector.shape_cast %2 : vector<1x16x16xbf16> to vector<16x16xbf16>
    %cst = arith.constant 0.000000e+00 : bf16
    %4 = vector.broadcast %cst : bf16 to vector<16x16xbf16>
    %5 = arith.cmpf ogt, %3, %4 : vector<16x16xbf16>
    %c0_5 = arith.constant 0 : index
    %c0_6 = arith.constant 0 : index
    %c0_7 = arith.constant 0 : index
    %6 = vector.load %arg3[%c0_5, %c0_6, %c0_7] : memref<9x64x64xf32, #tpu.memory_space<vmem>>, vector<1x64x64xf32>
    %7 = vector.shape_cast %6 : vector<1x64x64xf32> to vector<64x64xf32>
    %cst_8 = arith.constant dense<0.000000e+00> : vector<16x64xf32>
    %8 = tpu.matmul %1, %7, %cst_8 {dimension_numbers = #tpu.dot_dimension_numbers<[1], [0], [0], [1], [0, 0, 1, 1], [], []>} : vector<16x64xf32>, vector<64x64xf32>, vector<16x64xf32> -> vector<16x64xf32>
    %c0_9 = arith.constant 0 : index
    %c0_10 = arith.constant 0 : index
    %9 = vector.load %arg4[%c0_9, %c0_10] : memref<24x64xf32, #tpu.memory_space<vmem>>, vector<1x64xf32>
    %10 = vector.broadcast %9 : vector<1x64xf32> to vector<16x64xf32>
    %11 = arith.addf %8, %10 : vector<16x64xf32>
    %cst_11 = arith.constant 0.000000e+00 : f32
    %12 = vector.broadcast %cst_11 : f32 to vector<16x64xf32>
    %13 = arith.cmpf ogt, %11, %12 : vector<16x64xf32>
    %cst_12 = arith.constant 0.000000e+00 : f32
    %14 = vector.broadcast %cst_12 : f32 to vector<16x64xf32>
    %15 = arith.minimumf %11, %14 : vector<16x64xf32>
    %16 = math.exp %15 : vector<16x64xf32>
    %cst_13 = arith.constant 1.000000e+00 : f32
    %17 = vector.broadcast %cst_13 : f32 to vector<16x64xf32>
    %18 = arith.subf %16, %17 : vector<16x64xf32>
    %19 = arith.select %13, %11, %18 : vector<16x64xi1>, vector<16x64xf32>
    %c1 = arith.constant 1 : index
    %c0_14 = arith.constant 0 : index
    %c0_15 = arith.constant 0 : index
    %20 = vector.load %arg3[%c1, %c0_14, %c0_15] : memref<9x64x64xf32, #tpu.memory_space<vmem>>, vector<1x64x64xf32>
    %21 = vector.shape_cast %20 : vector<1x64x64xf32> to vector<64x64xf32>
    %cst_16 = arith.constant dense<0.000000e+00> : vector<16x64xf32>
    %22 = tpu.matmul %19, %21, %cst_16 {dimension_numbers = #tpu.dot_dimension_numbers<[1], [0], [0], [1], [0, 0, 1, 1], [], []>} : vector<16x64xf32>, vector<64x64xf32>, vector<16x64xf32> -> vector<16x64xf32>
    %c1_17 = arith.constant 1 : index
    %c0_18 = arith.constant 0 : index
    %23 = vector.load %arg4[%c1_17, %c0_18] : memref<24x64xf32, #tpu.memory_space<vmem>>, vector<1x64xf32>
    %24 = vector.broadcast %23 : vector<1x64xf32> to vector<16x64xf32>
    %25 = arith.addf %22, %24 : vector<16x64xf32>
    %cst_19 = arith.constant 0.000000e+00 : f32
    %26 = vector.broadcast %cst_19 : f32 to vector<16x64xf32>
    %27 = arith.cmpf ogt, %25, %26 : vector<16x64xf32>
    %cst_20 = arith.constant 0.000000e+00 : f32
    %28 = vector.broadcast %cst_20 : f32 to vector<16x64xf32>
    %29 = arith.minimumf %25, %28 : vector<16x64xf32>
    %30 = math.exp %29 : vector<16x64xf32>
    %cst_21 = arith.constant 1.000000e+00 : f32
    %31 = vector.broadcast %cst_21 : f32 to vector<16x64xf32>
    %32 = arith.subf %30, %31 : vector<16x64xf32>
    %33 = arith.select %27, %25, %32 : vector<16x64xi1>, vector<16x64xf32>
    %c2 = arith.constant 2 : index
    %c0_22 = arith.constant 0 : index
    %c0_23 = arith.constant 0 : index
    %34 = vector.load %arg3[%c2, %c0_22, %c0_23] : memref<9x64x64xf32, #tpu.memory_space<vmem>>, vector<1x64x64xf32>
    %35 = vector.shape_cast %34 : vector<1x64x64xf32> to vector<64x64xf32>
    %cst_24 = arith.constant dense<0.000000e+00> : vector<16x64xf32>
    %36 = tpu.matmul %33, %35, %cst_24 {dimension_numbers = #tpu.dot_dimension_numbers<[1], [0], [0], [1], [0, 0, 1, 1], [], []>} : vector<16x64xf32>, vector<64x64xf32>, vector<16x64xf32> -> vector<16x64xf32>
    %c2_25 = arith.constant 2 : index
    %c0_26 = arith.constant 0 : index
    %37 = vector.load %arg4[%c2_25, %c0_26] : memref<24x64xf32, #tpu.memory_space<vmem>>, vector<1x64xf32>
    %38 = vector.broadcast %37 : vector<1x64xf32> to vector<16x64xf32>
    %39 = arith.addf %36, %38 : vector<16x64xf32>
    %c3 = arith.constant 3 : index
    %c0_27 = arith.constant 0 : index
    %c0_28 = arith.constant 0 : index
    %40 = vector.load %arg3[%c3, %c0_27, %c0_28] : memref<9x64x64xf32, #tpu.memory_space<vmem>>, vector<1x64x64xf32>
    %41 = vector.shape_cast %40 : vector<1x64x64xf32> to vector<64x64xf32>
    %c6 = arith.constant 6 : index
    %c0_29 = arith.constant 0 : index
    %42 = vector.load %arg4[%c6, %c0_29] : memref<24x64xf32, #tpu.memory_space<vmem>>, vector<1x64xf32>
    %c7 = arith.constant 7 : index
    %c0_30 = arith.constant 0 : index
    %43 = vector.load %arg4[%c7, %c0_30] : memref<24x64xf32, #tpu.memory_space<vmem>>, vector<1x64xf32>
    %c8 = arith.constant 8 : index
    %c0_31 = arith.constant 0 : index
    %44 = vector.load %arg4[%c8, %c0_31] : memref<24x64xf32, #tpu.memory_space<vmem>>, vector<1x64xf32>
    %cst_32 = arith.constant dense<0.000000e+00> : vector<16x64xf32>
    %45 = tpu.matmul %39, %41, %cst_32 {dimension_numbers = #tpu.dot_dimension_numbers<[1], [0], [0], [1], [0, 0, 1, 1], [], []>} : vector<16x64xf32>, vector<64x64xf32>, vector<16x64xf32> -> vector<16x64xf32>
    %cst_33 = arith.constant dense<0.000000e+00> : vector<16x1xf32>
    %46 = tpu.matmul %45, %43, %cst_33 {dimension_numbers = #tpu.dot_dimension_numbers<[1], [1], [0], [0], [0, 0, 1, 0], [], []>} : vector<16x64xf32>, vector<1x64xf32>, vector<16x1xf32> -> vector<16x1xf32>
    %cst_34 = arith.constant dense<0.000000e+00> : vector<1x16xf32>
    %47 = tpu.matmul %42, %45, %cst_34 {dimension_numbers = #tpu.dot_dimension_numbers<[1], [1], [0], [0], [0, 0, 1, 0], [], []>} : vector<1x64xf32>, vector<16x64xf32>, vector<1x16xf32> -> vector<1x16xf32>
    %48 = vector.broadcast %46 : vector<16x1xf32> to vector<16x16xf32>
    %49 = vector.broadcast %47 : vector<1x16xf32> to vector<16x16xf32>
    %50 = arith.addf %48, %49 : vector<16x16xf32>
    %cst_35 = arith.constant 0.000000e+00 : f32
    %51 = vector.broadcast %cst_35 : f32 to vector<16x16xf32>
    %52 = arith.cmpf ogt, %50, %51 : vector<16x16xf32>
    %cst_36 = arith.constant 2.000000e-01 : f32
    %53 = vector.broadcast %cst_36 : f32 to vector<16x16xf32>
    %54 = arith.mulf %53, %50 : vector<16x16xf32>
    %55 = arith.select %52, %50, %54 : vector<16x16xi1>, vector<16x16xf32>
    %cst_37 = arith.constant -1.000000e+30 : f32
    %56 = vector.broadcast %cst_37 : f32 to vector<16x16xf32>
    %57 = arith.select %5, %55, %56 : vector<16x16xi1>, vector<16x16xf32>
    %cst_38 = arith.constant dense<0xFF800000> : vector<16xf32>
    %58 = vector.multi_reduction <maximumf>, %57, %cst_38 [1] : vector<16x16xf32> to vector<16xf32>
    %59 = vector.shape_cast %58 : vector<16xf32> to vector<16x1xf32>
    %60 = vector.broadcast %59 : vector<16x1xf32> to vector<16x16xf32>
    %61 = arith.subf %57, %60 : vector<16x16xf32>
    %62 = math.exp %61 : vector<16x16xf32>
    %cst_39 = arith.constant dense<0.000000e+00> : vector<16xf32>
    %63 = vector.multi_reduction <add>, %62, %cst_39 [1] : vector<16x16xf32> to vector<16xf32>
    %64 = vector.shape_cast %63 : vector<16xf32> to vector<16x1xf32>
    %65 = tpu.reciprocal %64 {approx = true} : vector<16x1xf32> -> vector<16x1xf32>
    %66 = vector.broadcast %65 : vector<16x1xf32> to vector<16x16xf32>
    %67 = arith.mulf %62, %66 : vector<16x16xf32>
    %cst_40 = arith.constant dense<0.000000e+00> : vector<16x64xf32>
    %68 = tpu.matmul %67, %45, %cst_40 {dimension_numbers = #tpu.dot_dimension_numbers<[1], [0], [0], [1], [0, 0, 1, 1], [], []>} : vector<16x16xf32>, vector<16x64xf32>, vector<16x64xf32> -> vector<16x64xf32>
    %69 = vector.broadcast %44 : vector<1x64xf32> to vector<16x64xf32>
    %70 = arith.addf %68, %69 : vector<16x64xf32>
    %71 = arith.addf %70, %39 : vector<16x64xf32>
    %c9 = arith.constant 9 : index
    %c0_41 = arith.constant 0 : index
    %72 = vector.load %arg4[%c9, %c0_41] : memref<24x64xf32, #tpu.memory_space<vmem>>, vector<1x64xf32>
    %c10 = arith.constant 10 : index
    %c0_42 = arith.constant 0 : index
    %73 = vector.load %arg4[%c10, %c0_42] : memref<24x64xf32, #tpu.memory_space<vmem>>, vector<1x64xf32>
    %cst_43 = arith.constant dense<0.000000e+00> : vector<16xf32>
    %74 = vector.multi_reduction <add>, %71, %cst_43 [1] : vector<16x64xf32> to vector<16xf32>
    %75 = vector.shape_cast %74 : vector<16xf32> to vector<16x1xf32>
    %cst_44 = arith.constant 6.400000e+01 : f32
    %76 = vector.broadcast %cst_44 : f32 to vector<16x1xf32>
    %77 = arith.divf %75, %76 : vector<16x1xf32>
    %78 = vector.broadcast %77 : vector<16x1xf32> to vector<16x64xf32>
    %79 = arith.subf %71, %78 : vector<16x64xf32>
    %80 = vector.broadcast %77 : vector<16x1xf32> to vector<16x64xf32>
    %81 = arith.subf %71, %80 : vector<16x64xf32>
    %82 = arith.mulf %79, %81 : vector<16x64xf32>
    %cst_45 = arith.constant dense<0.000000e+00> : vector<16xf32>
    %83 = vector.multi_reduction <add>, %82, %cst_45 [1] : vector<16x64xf32> to vector<16xf32>
    %84 = vector.shape_cast %83 : vector<16xf32> to vector<16x1xf32>
    %cst_46 = arith.constant 6.400000e+01 : f32
    %85 = vector.broadcast %cst_46 : f32 to vector<16x1xf32>
    %86 = arith.divf %84, %85 : vector<16x1xf32>
    %87 = vector.broadcast %77 : vector<16x1xf32> to vector<16x64xf32>
    %88 = arith.subf %71, %87 : vector<16x64xf32>
    %cst_47 = arith.constant 9.99999974E-6 : f32
    %89 = vector.broadcast %cst_47 : f32 to vector<16x1xf32>
    %90 = arith.addf %86, %89 : vector<16x1xf32>
    %91 = math.rsqrt %90 : vector<16x1xf32>
    %92 = vector.broadcast %91 : vector<16x1xf32> to vector<16x64xf32>
    %93 = arith.mulf %88, %92 : vector<16x64xf32>
    %94 = vector.broadcast %72 : vector<1x64xf32> to vector<16x64xf32>
    %95 = arith.mulf %93, %94 : vector<16x64xf32>
    %96 = vector.broadcast %73 : vector<1x64xf32> to vector<16x64xf32>
    %97 = arith.addf %95, %96 : vector<16x64xf32>
    %c4 = arith.constant 4 : index
    %c0_48 = arith.constant 0 : index
    %c0_49 = arith.constant 0 : index
    %98 = vector.load %arg3[%c4, %c0_48, %c0_49] : memref<9x64x64xf32, #tpu.memory_space<vmem>>, vector<1x64x64xf32>
    %99 = vector.shape_cast %98 : vector<1x64x64xf32> to vector<64x64xf32>
    %c11 = arith.constant 11 : index
    %c0_50 = arith.constant 0 : index
    %100 = vector.load %arg4[%c11, %c0_50] : memref<24x64xf32, #tpu.memory_space<vmem>>, vector<1x64xf32>
    %c12 = arith.constant 12 : index
    %c0_51 = arith.constant 0 : index
    %101 = vector.load %arg4[%c12, %c0_51] : memref<24x64xf32, #tpu.memory_space<vmem>>, vector<1x64xf32>
    %c13 = arith.constant 13 : index
    %c0_52 = arith.constant 0 : index
    %102 = vector.load %arg4[%c13, %c0_52] : memref<24x64xf32, #tpu.memory_space<vmem>>, vector<1x64xf32>
    %cst_53 = arith.constant dense<0.000000e+00> : vector<16x64xf32>
    %103 = tpu.matmul %97, %99, %cst_53 {dimension_numbers = #tpu.dot_dimension_numbers<[1], [0], [0], [1], [0, 0, 1, 1], [], []>} : vector<16x64xf32>, vector<64x64xf32>, vector<16x64xf32> -> vector<16x64xf32>
    %cst_54 = arith.constant dense<0.000000e+00> : vector<16x1xf32>
    %104 = tpu.matmul %103, %101, %cst_54 {dimension_numbers = #tpu.dot_dimension_numbers<[1], [1], [0], [0], [0, 0, 1, 0], [], []>} : vector<16x64xf32>, vector<1x64xf32>, vector<16x1xf32> -> vector<16x1xf32>
    %cst_55 = arith.constant dense<0.000000e+00> : vector<1x16xf32>
    %105 = tpu.matmul %100, %103, %cst_55 {dimension_numbers = #tpu.dot_dimension_numbers<[1], [1], [0], [0], [0, 0, 1, 0], [], []>} : vector<1x64xf32>, vector<16x64xf32>, vector<1x16xf32> -> vector<1x16xf32>
    %106 = vector.broadcast %104 : vector<16x1xf32> to vector<16x16xf32>
    %107 = vector.broadcast %105 : vector<1x16xf32> to vector<16x16xf32>
    %108 = arith.addf %106, %107 : vector<16x16xf32>
    %cst_56 = arith.constant 0.000000e+00 : f32
    %109 = vector.broadcast %cst_56 : f32 to vector<16x16xf32>
    %110 = arith.cmpf ogt, %108, %109 : vector<16x16xf32>
    %cst_57 = arith.constant 2.000000e-01 : f32
    %111 = vector.broadcast %cst_57 : f32 to vector<16x16xf32>
    %112 = arith.mulf %111, %108 : vector<16x16xf32>
    %113 = arith.select %110, %108, %112 : vector<16x16xi1>, vector<16x16xf32>
    %cst_58 = arith.constant -1.000000e+30 : f32
    %114 = vector.broadcast %cst_58 : f32 to vector<16x16xf32>
    %115 = arith.select %5, %113, %114 : vector<16x16xi1>, vector<16x16xf32>
    %cst_59 = arith.constant dense<0xFF800000> : vector<16xf32>
    %116 = vector.multi_reduction <maximumf>, %115, %cst_59 [1] : vector<16x16xf32> to vector<16xf32>
    %117 = vector.shape_cast %116 : vector<16xf32> to vector<16x1xf32>
    %118 = vector.broadcast %117 : vector<16x1xf32> to vector<16x16xf32>
    %119 = arith.subf %115, %118 : vector<16x16xf32>
    %120 = math.exp %119 : vector<16x16xf32>
    %cst_60 = arith.constant dense<0.000000e+00> : vector<16xf32>
    %121 = vector.multi_reduction <add>, %120, %cst_60 [1] : vector<16x16xf32> to vector<16xf32>
    %122 = vector.shape_cast %121 : vector<16xf32> to vector<16x1xf32>
    %123 = tpu.reciprocal %122 {approx = true} : vector<16x1xf32> -> vector<16x1xf32>
    %124 = vector.broadcast %123 : vector<16x1xf32> to vector<16x16xf32>
    %125 = arith.mulf %120, %124 : vector<16x16xf32>
    %cst_61 = arith.constant dense<0.000000e+00> : vector<16x64xf32>
    %126 = tpu.matmul %125, %103, %cst_61 {dimension_numbers = #tpu.dot_dimension_numbers<[1], [0], [0], [1], [0, 0, 1, 1], [], []>} : vector<16x16xf32>, vector<16x64xf32>, vector<16x64xf32> -> vector<16x64xf32>
    %127 = vector.broadcast %102 : vector<1x64xf32> to vector<16x64xf32>
    %128 = arith.addf %126, %127 : vector<16x64xf32>
    %129 = arith.addf %128, %97 : vector<16x64xf32>
    %c14 = arith.constant 14 : index
    %c0_62 = arith.constant 0 : index
    %130 = vector.load %arg4[%c14, %c0_62] : memref<24x64xf32, #tpu.memory_space<vmem>>, vector<1x64xf32>
    %c15 = arith.constant 15 : index
    %c0_63 = arith.constant 0 : index
    %131 = vector.load %arg4[%c15, %c0_63] : memref<24x64xf32, #tpu.memory_space<vmem>>, vector<1x64xf32>
    %cst_64 = arith.constant dense<0.000000e+00> : vector<16xf32>
    %132 = vector.multi_reduction <add>, %129, %cst_64 [1] : vector<16x64xf32> to vector<16xf32>
    %133 = vector.shape_cast %132 : vector<16xf32> to vector<16x1xf32>
    %cst_65 = arith.constant 6.400000e+01 : f32
    %134 = vector.broadcast %cst_65 : f32 to vector<16x1xf32>
    %135 = arith.divf %133, %134 : vector<16x1xf32>
    %136 = vector.broadcast %135 : vector<16x1xf32> to vector<16x64xf32>
    %137 = arith.subf %129, %136 : vector<16x64xf32>
    %138 = vector.broadcast %135 : vector<16x1xf32> to vector<16x64xf32>
    %139 = arith.subf %129, %138 : vector<16x64xf32>
    %140 = arith.mulf %137, %139 : vector<16x64xf32>
    %cst_66 = arith.constant dense<0.000000e+00> : vector<16xf32>
    %141 = vector.multi_reduction <add>, %140, %cst_66 [1] : vector<16x64xf32> to vector<16xf32>
    %142 = vector.shape_cast %141 : vector<16xf32> to vector<16x1xf32>
    %cst_67 = arith.constant 6.400000e+01 : f32
    %143 = vector.broadcast %cst_67 : f32 to vector<16x1xf32>
    %144 = arith.divf %142, %143 : vector<16x1xf32>
    %145 = vector.broadcast %135 : vector<16x1xf32> to vector<16x64xf32>
    %146 = arith.subf %129, %145 : vector<16x64xf32>
    %cst_68 = arith.constant 9.99999974E-6 : f32
    %147 = vector.broadcast %cst_68 : f32 to vector<16x1xf32>
    %148 = arith.addf %144, %147 : vector<16x1xf32>
    %149 = math.rsqrt %148 : vector<16x1xf32>
    %150 = vector.broadcast %149 : vector<16x1xf32> to vector<16x64xf32>
    %151 = arith.mulf %146, %150 : vector<16x64xf32>
    %152 = vector.broadcast %130 : vector<1x64xf32> to vector<16x64xf32>
    %153 = arith.mulf %151, %152 : vector<16x64xf32>
    %154 = vector.broadcast %131 : vector<1x64xf32> to vector<16x64xf32>
    %155 = arith.addf %153, %154 : vector<16x64xf32>
    %c5 = arith.constant 5 : index
    %c0_69 = arith.constant 0 : index
    %c0_70 = arith.constant 0 : index
    %156 = vector.load %arg3[%c5, %c0_69, %c0_70] : memref<9x64x64xf32, #tpu.memory_space<vmem>>, vector<1x64x64xf32>
    %157 = vector.shape_cast %156 : vector<1x64x64xf32> to vector<64x64xf32>
    %c16 = arith.constant 16 : index
    %c0_71 = arith.constant 0 : index
    %158 = vector.load %arg4[%c16, %c0_71] : memref<24x64xf32, #tpu.memory_space<vmem>>, vector<1x64xf32>
    %c17 = arith.constant 17 : index
    %c0_72 = arith.constant 0 : index
    %159 = vector.load %arg4[%c17, %c0_72] : memref<24x64xf32, #tpu.memory_space<vmem>>, vector<1x64xf32>
    %c18 = arith.constant 18 : index
    %c0_73 = arith.constant 0 : index
    %160 = vector.load %arg4[%c18, %c0_73] : memref<24x64xf32, #tpu.memory_space<vmem>>, vector<1x64xf32>
    %cst_74 = arith.constant dense<0.000000e+00> : vector<16x64xf32>
    %161 = tpu.matmul %155, %157, %cst_74 {dimension_numbers = #tpu.dot_dimension_numbers<[1], [0], [0], [1], [0, 0, 1, 1], [], []>} : vector<16x64xf32>, vector<64x64xf32>, vector<16x64xf32> -> vector<16x64xf32>
    %cst_75 = arith.constant dense<0.000000e+00> : vector<16x1xf32>
    %162 = tpu.matmul %161, %159, %cst_75 {dimension_numbers = #tpu.dot_dimension_numbers<[1], [1], [0], [0], [0, 0, 1, 0], [], []>} : vector<16x64xf32>, vector<1x64xf32>, vector<16x1xf32> -> vector<16x1xf32>
    %cst_76 = arith.constant dense<0.000000e+00> : vector<1x16xf32>
    %163 = tpu.matmul %158, %161, %cst_76 {dimension_numbers = #tpu.dot_dimension_numbers<[1], [1], [0], [0], [0, 0, 1, 0], [], []>} : vector<1x64xf32>, vector<16x64xf32>, vector<1x16xf32> -> vector<1x16xf32>
    %164 = vector.broadcast %162 : vector<16x1xf32> to vector<16x16xf32>
    %165 = vector.broadcast %163 : vector<1x16xf32> to vector<16x16xf32>
    %166 = arith.addf %164, %165 : vector<16x16xf32>
    %cst_77 = arith.constant 0.000000e+00 : f32
    %167 = vector.broadcast %cst_77 : f32 to vector<16x16xf32>
    %168 = arith.cmpf ogt, %166, %167 : vector<16x16xf32>
    %cst_78 = arith.constant 2.000000e-01 : f32
    %169 = vector.broadcast %cst_78 : f32 to vector<16x16xf32>
    %170 = arith.mulf %169, %166 : vector<16x16xf32>
    %171 = arith.select %168, %166, %170 : vector<16x16xi1>, vector<16x16xf32>
    %cst_79 = arith.constant -1.000000e+30 : f32
    %172 = vector.broadcast %cst_79 : f32 to vector<16x16xf32>
    %173 = arith.select %5, %171, %172 : vector<16x16xi1>, vector<16x16xf32>
    %cst_80 = arith.constant dense<0xFF800000> : vector<16xf32>
    %174 = vector.multi_reduction <maximumf>, %173, %cst_80 [1] : vector<16x16xf32> to vector<16xf32>
    %175 = vector.shape_cast %174 : vector<16xf32> to vector<16x1xf32>
    %176 = vector.broadcast %175 : vector<16x1xf32> to vector<16x16xf32>
    %177 = arith.subf %173, %176 : vector<16x16xf32>
    %178 = math.exp %177 : vector<16x16xf32>
    %cst_81 = arith.constant dense<0.000000e+00> : vector<16xf32>
    %179 = vector.multi_reduction <add>, %178, %cst_81 [1] : vector<16x16xf32> to vector<16xf32>
    %180 = vector.shape_cast %179 : vector<16xf32> to vector<16x1xf32>
    %181 = tpu.reciprocal %180 {approx = true} : vector<16x1xf32> -> vector<16x1xf32>
    %182 = vector.broadcast %181 : vector<16x1xf32> to vector<16x16xf32>
    %183 = arith.mulf %178, %182 : vector<16x16xf32>
    %cst_82 = arith.constant dense<0.000000e+00> : vector<16x64xf32>
    %184 = tpu.matmul %183, %161, %cst_82 {dimension_numbers = #tpu.dot_dimension_numbers<[1], [0], [0], [1], [0, 0, 1, 1], [], []>} : vector<16x16xf32>, vector<16x64xf32>, vector<16x64xf32> -> vector<16x64xf32>
    %185 = vector.broadcast %160 : vector<1x64xf32> to vector<16x64xf32>
    %186 = arith.addf %184, %185 : vector<16x64xf32>
    %187 = arith.addf %186, %155 : vector<16x64xf32>
    %c19 = arith.constant 19 : index
    %c0_83 = arith.constant 0 : index
    %188 = vector.load %arg4[%c19, %c0_83] : memref<24x64xf32, #tpu.memory_space<vmem>>, vector<1x64xf32>
    %c20 = arith.constant 20 : index
    %c0_84 = arith.constant 0 : index
    %189 = vector.load %arg4[%c20, %c0_84] : memref<24x64xf32, #tpu.memory_space<vmem>>, vector<1x64xf32>
    %cst_85 = arith.constant dense<0.000000e+00> : vector<16xf32>
    %190 = vector.multi_reduction <add>, %187, %cst_85 [1] : vector<16x64xf32> to vector<16xf32>
    %191 = vector.shape_cast %190 : vector<16xf32> to vector<16x1xf32>
    %cst_86 = arith.constant 6.400000e+01 : f32
    %192 = vector.broadcast %cst_86 : f32 to vector<16x1xf32>
    %193 = arith.divf %191, %192 : vector<16x1xf32>
    %194 = vector.broadcast %193 : vector<16x1xf32> to vector<16x64xf32>
    %195 = arith.subf %187, %194 : vector<16x64xf32>
    %196 = vector.broadcast %193 : vector<16x1xf32> to vector<16x64xf32>
    %197 = arith.subf %187, %196 : vector<16x64xf32>
    %198 = arith.mulf %195, %197 : vector<16x64xf32>
    %cst_87 = arith.constant dense<0.000000e+00> : vector<16xf32>
    %199 = vector.multi_reduction <add>, %198, %cst_87 [1] : vector<16x64xf32> to vector<16xf32>
    %200 = vector.shape_cast %199 : vector<16xf32> to vector<16x1xf32>
    %cst_88 = arith.constant 6.400000e+01 : f32
    %201 = vector.broadcast %cst_88 : f32 to vector<16x1xf32>
    %202 = arith.divf %200, %201 : vector<16x1xf32>
    %203 = vector.broadcast %193 : vector<16x1xf32> to vector<16x64xf32>
    %204 = arith.subf %187, %203 : vector<16x64xf32>
    %cst_89 = arith.constant 9.99999974E-6 : f32
    %205 = vector.broadcast %cst_89 : f32 to vector<16x1xf32>
    %206 = arith.addf %202, %205 : vector<16x1xf32>
    %207 = math.rsqrt %206 : vector<16x1xf32>
    %208 = vector.broadcast %207 : vector<16x1xf32> to vector<16x64xf32>
    %209 = arith.mulf %204, %208 : vector<16x64xf32>
    %210 = vector.broadcast %188 : vector<1x64xf32> to vector<16x64xf32>
    %211 = arith.mulf %209, %210 : vector<16x64xf32>
    %212 = vector.broadcast %189 : vector<1x64xf32> to vector<16x64xf32>
    %213 = arith.addf %211, %212 : vector<16x64xf32>
    %c6_90 = arith.constant 6 : index
    %c0_91 = arith.constant 0 : index
    %c0_92 = arith.constant 0 : index
    %214 = vector.load %arg3[%c6_90, %c0_91, %c0_92] : memref<9x64x64xf32, #tpu.memory_space<vmem>>, vector<1x64x64xf32>
    %215 = vector.shape_cast %214 : vector<1x64x64xf32> to vector<64x64xf32>
    %cst_93 = arith.constant dense<0.000000e+00> : vector<16x64xf32>
    %216 = tpu.matmul %213, %215, %cst_93 {dimension_numbers = #tpu.dot_dimension_numbers<[1], [0], [0], [1], [0, 0, 1, 1], [], []>} : vector<16x64xf32>, vector<64x64xf32>, vector<16x64xf32> -> vector<16x64xf32>
    %c3_94 = arith.constant 3 : index
    %c0_95 = arith.constant 0 : index
    %217 = vector.load %arg4[%c3_94, %c0_95] : memref<24x64xf32, #tpu.memory_space<vmem>>, vector<1x64xf32>
    %218 = vector.broadcast %217 : vector<1x64xf32> to vector<16x64xf32>
    %219 = arith.addf %216, %218 : vector<16x64xf32>
    %cst_96 = arith.constant 0.000000e+00 : f32
    %220 = vector.broadcast %cst_96 : f32 to vector<16x64xf32>
    %221 = arith.cmpf ogt, %219, %220 : vector<16x64xf32>
    %cst_97 = arith.constant 0.000000e+00 : f32
    %222 = vector.broadcast %cst_97 : f32 to vector<16x64xf32>
    %223 = arith.minimumf %219, %222 : vector<16x64xf32>
    %224 = math.exp %223 : vector<16x64xf32>
    %cst_98 = arith.constant 1.000000e+00 : f32
    %225 = vector.broadcast %cst_98 : f32 to vector<16x64xf32>
    %226 = arith.subf %224, %225 : vector<16x64xf32>
    %227 = arith.select %221, %219, %226 : vector<16x64xi1>, vector<16x64xf32>
    %c7_99 = arith.constant 7 : index
    %c0_100 = arith.constant 0 : index
    %c0_101 = arith.constant 0 : index
    %228 = vector.load %arg3[%c7_99, %c0_100, %c0_101] : memref<9x64x64xf32, #tpu.memory_space<vmem>>, vector<1x64x64xf32>
    %229 = vector.shape_cast %228 : vector<1x64x64xf32> to vector<64x64xf32>
    %cst_102 = arith.constant dense<0.000000e+00> : vector<16x64xf32>
    %230 = tpu.matmul %227, %229, %cst_102 {dimension_numbers = #tpu.dot_dimension_numbers<[1], [0], [0], [1], [0, 0, 1, 1], [], []>} : vector<16x64xf32>, vector<64x64xf32>, vector<16x64xf32> -> vector<16x64xf32>
    %c4_103 = arith.constant 4 : index
    %c0_104 = arith.constant 0 : index
    %231 = vector.load %arg4[%c4_103, %c0_104] : memref<24x64xf32, #tpu.memory_space<vmem>>, vector<1x64xf32>
    %232 = vector.broadcast %231 : vector<1x64xf32> to vector<16x64xf32>
    %233 = arith.addf %230, %232 : vector<16x64xf32>
    %cst_105 = arith.constant 0.000000e+00 : f32
    %234 = vector.broadcast %cst_105 : f32 to vector<16x64xf32>
    %235 = arith.cmpf ogt, %233, %234 : vector<16x64xf32>
    %cst_106 = arith.constant 0.000000e+00 : f32
    %236 = vector.broadcast %cst_106 : f32 to vector<16x64xf32>
    %237 = arith.minimumf %233, %236 : vector<16x64xf32>
    %238 = math.exp %237 : vector<16x64xf32>
    %cst_107 = arith.constant 1.000000e+00 : f32
    %239 = vector.broadcast %cst_107 : f32 to vector<16x64xf32>
    %240 = arith.subf %238, %239 : vector<16x64xf32>
    %241 = arith.select %235, %233, %240 : vector<16x64xi1>, vector<16x64xf32>
    %c8_108 = arith.constant 8 : index
    %c0_109 = arith.constant 0 : index
    %c0_110 = arith.constant 0 : index
    %242 = vector.load %arg3[%c8_108, %c0_109, %c0_110] : memref<9x64x64xf32, #tpu.memory_space<vmem>>, vector<1x64x64xf32>
    %243 = vector.shape_cast %242 : vector<1x64x64xf32> to vector<64x64xf32>
    %cst_111 = arith.constant dense<0.000000e+00> : vector<16x64xf32>
    %244 = tpu.matmul %241, %243, %cst_111 {dimension_numbers = #tpu.dot_dimension_numbers<[1], [0], [0], [1], [0, 0, 1, 1], [], []>} : vector<16x64xf32>, vector<64x64xf32>, vector<16x64xf32> -> vector<16x64xf32>
    %c5_112 = arith.constant 5 : index
    %c0_113 = arith.constant 0 : index
    %245 = vector.load %arg4[%c5_112, %c0_113] : memref<24x64xf32, #tpu.memory_space<vmem>>, vector<1x64xf32>
    %246 = vector.broadcast %245 : vector<1x64xf32> to vector<16x64xf32>
    %247 = arith.addf %244, %246 : vector<16x64xf32>
    %c0_114 = arith.constant 0 : index
    %c0_115 = arith.constant 0 : index
    %c0_116 = arith.constant 0 : index
    %248 = vector.load %arg5[%c0_114, %c0_115, %c0_116] : memref<1x16x64xf32, #tpu.memory_space<vmem>>, vector<1x16x64xf32>
    %249 = vector.shape_cast %248 : vector<1x16x64xf32> to vector<16x64xf32>
    %250 = vector.shape_cast %247 : vector<16x64xf32> to vector<1x16x64xf32>
    tpu.vector_store %arg5[%c0_114, %c0_115, %c0_116], %250 {strides = array<i32>} : memref<1x16x64xf32, #tpu.memory_space<vmem>>, vector<1x16x64xf32>,
    return
  }
  func.func @transform_0(%arg0: i32) -> (i32, i32, i32) {
    %c0_i32 = arith.constant 0 : i32
    %c0_i32_0 = arith.constant 0 : i32
    %c0_i32_1 = arith.constant 0 : i32
    return %arg0, %c0_i32, %c0_i32_0 : i32, i32, i32
  }
  func.func @transform_1(%arg0: i32) -> (i32, i32, i32) {
    %c0_i32 = arith.constant 0 : i32
    %c0_i32_0 = arith.constant 0 : i32
    %c0_i32_1 = arith.constant 0 : i32
    return %arg0, %c0_i32, %c0_i32_0 : i32, i32, i32
  }
  func.func @transform_2(%arg0: i32) -> (i32, i32, i32) {
    %c0_i32 = arith.constant 0 : i32
    %c0_i32_0 = arith.constant 0 : i32
    %c0_i32_1 = arith.constant 0 : i32
    %c0_i32_2 = arith.constant 0 : i32
    return %c0_i32, %c0_i32_0, %c0_i32_1 : i32, i32, i32
  }
  func.func @transform_3(%arg0: i32) -> (i32, i32) {
    %c0_i32 = arith.constant 0 : i32
    %c0_i32_0 = arith.constant 0 : i32
    %c0_i32_1 = arith.constant 0 : i32
    return %c0_i32, %c0_i32_0 : i32, i32
  }
  func.func @transform_4(%arg0: i32) -> (i32, i32, i32) {
    %c0_i32 = arith.constant 0 : i32
    %c0_i32_0 = arith.constant 0 : i32
    %c0_i32_1 = arith.constant 0 : i32
    return %arg0, %c0_i32, %c0_i32_0 : i32, i32, i32
  }
}

</mosaic_0001>

<bundles_post_ra>
// kernel: net_forward_graphs.1
= control target key start
LH: loop header
LB: loop body
LE: loop exit
PB: predicated region body
PF: predicated region fallthrough
CT: control target
= control target key end

     0   :  { %s2097_s0 = inlined_call_operand.hbm [shape: f32[4,16,64], index: 0, kind: input, shape index: {}]   ;;  %s2098_s1 = inlined_call_operand.hbm [shape: bf16[4,16,16], index: 1, kind: input, shape index: {}]   ;;  %s2099_s2 = inlined_call_operand.hbm [shape: f32[9,64,64], index: 2, kind: input, shape index: {}]   ;;  %s2100_s3 = inlined_call_operand.hbm [shape: f32[24,64], index: 3, kind: input, shape index: {}]   ;;  %s2101_s4 = inlined_call_operand.hbm [shape: f32[4,16,64], index: 4, kind: output, shape index: {}]  }
   0x1   :  { %2104 = sst [smem:[#allocation17_spill]] %s2099_s2 }
   0x2   :  { %2105 = sst [smem:[#allocation18_spill]] %s2100_s3 }
   0x3   :  { %9 = vsyncpa [#allocation3], 0 }
   0x4   :  { %11 = vsyncpa [#allocation3 + $0x1], 0 }
   0x5   :  { %12 = vsyncpa [#allocation6], 0 }
   0x6   :  { %14 = vsyncpa [#allocation6 + $0x1], 0 }
   0x7   :  { %15 = vsyncpa [#allocation9], 0 }
   0x8   :  { %16 = vsyncpa [#allocation4], 0 }
   0x9   :  { %18 = vsyncpa [#allocation4 + $0x1], 0  ;;  %s1781_s15 = smov 0   ;;  %s1783_s16 = smov 0  }
   0xa   :  { %s1785_s17 = smov 0   ;;  %s1787_s18 = smov 0  }
   0xb LB: > { %s1802_s19 = sadd.s32 4294967295, %s1745_s18   ;;  %s1318_s20 = sadd.s32 4294967294, %s1745_s18   ;;  %s1745_s18 = sphi %s1787_s18, %s2124_s18   ;;  %s1741_s17 = sphi %s1785_s17, %s2123_s17   ;;  %s1737_s16 = sphi %s1783_s16, %s2122_s16   ;;  %s1733_s15 = sphi %s1781_s15, %s2121_s15  }
   0xc   : > { %p44_p0 = scmp.ne.s32.totalorder %s1737_s16, %s1733_s15  ;;  %p45_p1 = scmp.eq.s32.totalorder %s1802_s19, 0 }
   0xd   : > { %p136_p2 = scmp.eq.s32.totalorder %s1802_s19, 3  ;;  %p142_p3 = scmp.eq.s32.totalorder %s1318_s20, 3 }
   0xe   : > { %p1811_p4 = por %p45_p1, %p44_p0  ;;  %p1319_p5 = scmp.ge.s32.totalorder %s1745_s18, 1 }
   0xf   : > { %p1816_p6 = por %p142_p3, %p44_p0  ;;  %p149_p7 = scmp.lt.s32.totalorder %s1745_s18, 5 }
  0x10   : > { %s2108_s2 = sld [smem:[#allocation17_spill]]  ;;  %s1747_s27 = smov [#allocation7]  }
  0x11   : > { %p1824_p8 = pnand %p1319_p5, %p149_p7  ;;  %s162_s28 = sshll.u32 %s1747_s27, 4  ;;  %s163_s28 = int_to_ptr.vmem [resolvable:$true] %s162_s28 }
  0x12   : > { %s2110_s3 = sld [smem:[#allocation18_spill]]  ;;  %s2102_s6 = smov 128  }
  0x13   : > { %p1410_p9 = pneg %p1824_p8  ;;  %s2103_s7 = smov 8  }
  0x14   : > { %s1750_s8 = smov [#allocation8]   ;;  %s1842_s10 = sadd.s32 1, %s1745_s18  }
  0x15   : > { %p1411_p10 = pnand %p1410_p9, %p45_p1  ;;  %s176_s9 = sshll.u32 %s1750_s8, 4  ;;  %s177_s9 = int_to_ptr.vmem [resolvable:$true] %s176_s9 }
  0x16   : > { %s160_s25 = sshll.u32 %s2108_s2, 4  ;;  %s31_s11 = sadd.s32 1, %s1741_s17  ;;  %s161_s25 = int_to_ptr.hbm [resolvable:$true] %s160_s25 }
  0x17   : > { %1413 = dma.hbm_to_vmem [thread:$0]  (!%p1411_p10), %s161_s25, 9216, %s163_s28, [#allocation6], %s2102_s6, %s2102_s6, %s2103_s7  }
  0x18   : > { %s174_s5 = sshll.u32 %s2110_s3, 4  ;;  %s28_s12 = ssub.s32 %s1745_s18, %s1842_s10  ;;  %s175_s5 = int_to_ptr.hbm [resolvable:$true] %s174_s5 }
  0x19   : > { %1416 = dma.hbm_to_vmem [thread:$0]  (!%p1411_p10), %s175_s5, 384, %s177_s9, [#allocation9], %s2102_s6, %s2102_s6, %s2103_s7  }
  0x1a   : > { %p38_p11 = scmp.ne.s32.totalorder %s1741_s17, %s1737_s16  ;;  %p29_p12 = scmp.eq.s32.totalorder %s28_s12, 0 }
  0x1b   : > { %p39_p13 = scmp.eq.s32.totalorder %s1745_s18, 0  ;;  %p1430_p3 = scmp.lt.s32.totalorder %s1745_s18, 4 }
  0x1c   : > { %p1852_p0 = por %p136_p2, %p38_p11  ;;  %s1861_s20 = sand.u32 1, %s1741_s17  }
  0x1d   : > { %s1858_s14 = scalar_select %p29_p12, %s1741_s17, %s31_s11  }
  0x1e   : > { %p40_p5 = por %p39_p13, %p38_p11  ;;  %s1323_s23 = sshll.u32 %s1861_s20, 4 }
  0x1f   : > { %2112 = sst [smem:[#allocation16_spill]] %s1858_s14  ;;  %s1381_s24 = sshll.u32 %s1745_s18, 4 }
  0x20   : > { %s199_s28 = scalar_lea.hbm %s2097_s0, %s1381_s24  ;;  %s194_s29 = scalar_lea.vmem [#allocation2], %s1323_s23 }
  0x21   : > { %s202_s30 = sshll.u32 %s194_s29, 4  ;;  %s200_s5 = sshll.u32 %s199_s28, 4  ;;  %s203_s30 = int_to_ptr.vmem [resolvable:$true] %s202_s30  ;;  %s201_s5 = int_to_ptr.hbm [resolvable:$true] %s200_s5 }
  0x22   : > { %p1868_p2 = pnand %p1430_p3, %p40_p5  ;;  %s212_s9 = sand.u32 1, %s1745_s18  }
  0x23   : > { %s1326_s11 = sshll.u32 %s1861_s20, 3  ;;  %s191_s12 = scalar_lea.sflag [#allocation3], %s1861_s20 }
  0x24   : > { %s1607_s6 = sshra.s32 %s201_s5, 4  ;;  %p1611_p9 = pneg %p1868_p2  ;;  %s1608_s6 = int_to_ptr.hbm [resolvable:$true] %s1607_s6 }
  0x25   : > { %s1609_s7 = scalar_lea.hbm %s1608_s6, 16  ;;  %s1614_s25 = scalar_lea.hbm %s2097_s0, 64 }
  0x26   : > { %p1610_p7 = scmp.ne.s32.totalorder %s1608_s6, %s1609_s7  ;;  %p1615_p12 = scmp.lt.s32.totalorder %s1608_s6, %s2097_s0 }
  0x27   : > { %p1616_p13 = scmp.lt.s32.totalorder %s1614_s25, %s1609_s7 }
  0x28   : > { %p1612_p10 = pnand %p1611_p9, %p1610_p7 }
  0x29   : > { %p1617_p3 = por %p1616_p13, %p1615_p12 }
  0x2a   : > { %p1613_p11 = pneg %p1612_p10 }
  0x2c   : > { %p1618_p5 = pnand %p1617_p3, %p1613_p11 }
  0x2e   : > { %1621 = shalt.err (!%p1618_p5)
}
  0x2f   : > { %s2114_s20 = smov 8   ;;  %s2115_s29 = smov 128  }
  0x30   : > { %1420 = dma.hbm_to_vmem [thread:$0]  (!%p1868_p2), %s201_s5, 256, %s203_s30, %s191_s12, %s2115_s29, %s2115_s29, %s2114_s20  }
  0x31   : > { %s1382_s2 = sshll.u32 %s1745_s18, 3  ;;  %s216_s14 = scalar_lea.vmem [#allocation5], %s1326_s11 }
  0x32   : > { %s221_s24 = scalar_lea.hbm %s2098_s1, %s1382_s2  ;;  %s224_s27 = sshll.u32 %s216_s14, 4  ;;  %s225_s27 = int_to_ptr.vmem [resolvable:$true] %s224_s27 }
  0x33   : > { %s222_s6 = sshll.u32 %s221_s24, 4  ;;  %s213_s7 = scalar_lea.sflag [#allocation6], %s212_s9  ;;  %s223_s6 = int_to_ptr.hbm [resolvable:$true] %s222_s6 }
  0x34   : > { %s1637_s25 = sshra.s32 %s223_s6, 4  ;;  %s1644_s12 = scalar_lea.hbm %s2098_s1, 32  ;;  %s1638_s25 = int_to_ptr.hbm [resolvable:$true] %s1637_s25 }
  0x35   : > { %s1639_s28 = scalar_lea.hbm %s1638_s25, 8  ;;  %p1645_p12 = scmp.lt.s32.totalorder %s1638_s25, %s2098_s1 }
  0x36   : > { %p1640_p7 = scmp.ne.s32.totalorder %s1638_s25, %s1639_s28  ;;  %p1646_p13 = scmp.lt.s32.totalorder %s1644_s12, %s1639_s28 }
  0x38   : > { %p1642_p10 = pnand %p1640_p7, %p1611_p9  ;;  %p1647_p3 = por %p1646_p13, %p1645_p12 }
  0x3a   : > { %p1643_p11 = pneg %p1642_p10 }
  0x3c   : > { %p1648_p5 = pnand %p1647_p3, %p1643_p11 }
  0x3e   : > { %1651 = shalt.err (!%p1648_p5)
}
  0x3f   : > { %s1751_s14 = smov 64   ;;  %s1752_s9 = smov 4  }
  0x40   : > { %1423 = dma.hbm_to_vmem [thread:$0]  (!%p1868_p2), %s223_s6, 128, %s225_s27, %s213_s7, %s1751_s14, %s1751_s14, %s1752_s9  }
  0x41   : > { %236 = sbr.rel (%p1824_p8) target bundleno = 3759 (0xeaf), region = 36  ;;  %s1909_s11 = sand.u32 (!%p1824_p8), 1, %s1737_s16  }
  0x42   : > { %s1330_s20 = sshll.u32 (!%p1824_p8), %s1909_s11, 4  ;;  %s239_s29 = scalar_lea.sflag (!%p1824_p8), [#allocation3], %s1909_s11 }
  0x43   : > { %s1915_s23 = scalar_lea.vmem (!%p1824_p8), [#allocation2], %s1330_s20 }
  0x46   : > { %1712 = dma.done.wait (%p1811_p4), %s239_s29, 256  }
  0x47   : > { %1714 = vsyncadd (%p1811_p4), %s239_s29, 4294967040  ;;  %s248_s26 = sand.u32 1, %s1802_s19   ;;  %s1331_s8 = sshll.u32 %s1909_s11, 3 }
  0x48   : > { %s249_s24 = scalar_lea.sflag [#allocation6], %s248_s26  ;;  %s1923_s27 = scalar_lea.vmem [#allocation5], %s1331_s8 }
  0x49   : > { %1716 = dma.done.wait (%p1811_p4), %s249_s24, 128  }
  0x4a   : > { %1718 = vsyncadd (%p1811_p4), %s249_s24, 4294967168 }
  0x4b   : > { %1720 = dma.done.wait (%p45_p1), [#allocation6], 9216  }
  0x4c   : > { %1722 = vsyncadd (%p45_p1), [#allocation6], 4294958080 }
  0x4d   : > { %1724 = dma.done.wait (%p45_p1), [#allocation9], 384  }
  0x4e   : > { %1726 = vsyncadd (%p45_p1), [#allocation9], 4294966912  ;;  %v308_v0 = vld [vmem:[#allocation7 + $0x38] sm:$0xff]  ;;  %v307_v1 = vld [vmem:[#allocation7 + $0x30] sm:$0xff]  ;;  %vm311_vm0 = vcmask 523264   ;;  %vm535_vm7 = vcmask 130048  }
  0x4f   : > { %326 = vmatpush.msra.mxu0 %v308_v0  ;;  %v306_v2 = vld [vmem:[#allocation7 + $0x28] sm:$0xff]  ;;  %v305_v3 = vld [vmem:[#allocation7 + $0x20] sm:$0xff]  ;;  %v304_v4 = vld [vmem:[#allocation7 + $0x18] sm:$0xff]  ;;  %s292_s21 = scalar_lea.vmem [#allocation10], %s1330_s20  ;;  %s1383_s6 = sshll.u32 %s1802_s19, 4 }
  0x50   : > { %v303_v5 = vld [vmem:[#allocation7 + $0x10] sm:$0xff]  ;;  %v302_v6 = vld [vmem:[#allocation7 + $0x8] sm:$0xff]  ;;  %v301_v7 = vld [vmem:[#allocation7] sm:$0xff]  ;;  %s1199_s28 = scalar_lea.hbm %s2101_s4, %s1383_s6  ;;  %s1200_s30 = sshll.u32 %s292_s21, 4  ;;  %s1201_s30 = int_to_ptr.vmem [resolvable:$true] %s1200_s30 }
  0x51   : > { %327 = vmatpush.msra.mxu0 %v307_v1  ;;  %v293_v8 = vld [vmem:[%s1915_s23] sm:$0xff]  ;;  %v294_v9 = vld [vmem:[%s1915_s23 + $0x8] sm:$0xff]  ;;  %s1202_s5 = sshll.u32 %s1199_s28, 4  ;;  %s1188_s12 = scalar_lea.sflag [#allocation4], %s1909_s11  ;;  %s1203_s5 = int_to_ptr.hbm [resolvable:$true] %s1202_s5 }
  0x52   : > { %v361_v10 = vld [vmem:[#allocation7 + $0x78] sm:$0xff]  ;;  %v360_v11 = vld [vmem:[#allocation7 + $0x70] sm:$0xff]  ;;  %v359_v12 = vld [vmem:[#allocation7 + $0x68] sm:$0xff]  ;;  %s1681_s3 = sshra.s32 %s1203_s5, 4  ;;  %s1687_s9 = scalar_lea.hbm %s2101_s4, 64  ;;  %s1682_s3 = int_to_ptr.hbm [resolvable:$true] %s1681_s3 }
  0x53   : > { %328 = vmatpush.msra.mxu0 %v306_v2  ;;  %378 = vmatpush.msra.mxu1 %v361_v10  ;;  %v358_v13 = vld [vmem:[#allocation7 + $0x60] sm:$0xff]  ;;  %v357_v14 = vld [vmem:[#allocation7 + $0x58] sm:$0xff]  ;;  %v356_v15 = vld [vmem:[#allocation7 + $0x50] sm:$0xff]  ;;  %s1683_s2 = scalar_lea.hbm %s1682_s3, 16  ;;  %p1688_p2 = scmp.lt.s32.totalorder %s1682_s3, %s2101_s4 }
  0x54   : > { %v355_v16 = vld [vmem:[#allocation7 + $0x48] sm:$0xff]  ;;  %v354_v17 = vld [vmem:[#allocation7 + $0x40] sm:$0xff]  ;;  %v413_v33 = vld [vmem:[#allocation7 + $0xb8] sm:$0xff]  ;;  %p1684_p1 = scmp.ne.s32.totalorder %s1682_s3, %s1683_s2  ;;  %p1689_p9 = scmp.lt.s32.totalorder %s1687_s9, %s1683_s2 }
  0x55   : > { %329 = vmatpush.msra.mxu0 %v305_v3  ;;  %379 = vmatpush.msra.mxu1 %v360_v11  ;;  %v1475_v18 = vld [vmem:[#allocation8] ss:$0 sm:$0xff]  ;;  %v412_v34 = vld [vmem:[#allocation7 + $0xb0] sm:$0xff]  ;;  %v411_v35 = vld [vmem:[#allocation7 + $0xa8] sm:$0xff] }
  0x56   : > { %430 = vmatpush.msra.mxu2 %v413_v33  ;;  %v410_v36 = vld [vmem:[#allocation7 + $0xa0] sm:$0xff]  ;;  %v409_v37 = vld [vmem:[#allocation7 + $0x98] sm:$0xff]  ;;  %v408_v38 = vld [vmem:[#allocation7 + $0x90] sm:$0xff]  ;;  %p1685_p4 = pnand %p1684_p1, %p1852_p0  ;;  %p1690_p7 = por %p1689_p9, %p1688_p2 }
  0x57   : > { %330 = vmatpush.msra.mxu0 %v304_v4  ;;  %380 = vmatpush.msra.mxu1 %v359_v12  ;;  %v407_v39 = vld [vmem:[#allocation7 + $0x88] sm:$0xff]  ;;  %v406_v40 = vld [vmem:[#allocation7 + $0x80] sm:$0xff]  ;;  %v453_v41 = vld [vmem:[#allocation7 + $0xf8] sm:$0xff] }
  0x58   : > { %431 = vmatpush.msra.mxu2 %v412_v34  ;;  %v452_v42 = vld [vmem:[#allocation7 + $0xf0] sm:$0xff]  ;;  %471 = vmatpush.msra.mxu3 %v453_v41  ;;  %v451_v43 = vld [vmem:[#allocation7 + $0xe8] sm:$0xff]  ;;  %v1476_v44 = vld [vmem:[#allocation8 + $0x1] ss:$0 sm:$0xff]  ;;  %p1686_p8 = pneg %p1685_p4 }
  0x59   : > { %331 = vmatpush.msra.mxu0 %v303_v5  ;;  %381 = vmatpush.msra.mxu1 %v358_v13  ;;  %v450_v45 = vld [vmem:[#allocation7 + $0xe0] sm:$0xff]  ;;  %v449_v46 = vld [vmem:[#allocation7 + $0xd8] sm:$0xff]  ;;  %v448_v49 = vld [vmem:[#allocation7 + $0xd0] sm:$0xff] }
  0x5a   : > { %432 = vmatpush.msra.mxu2 %v411_v35  ;;  %472 = vmatpush.msra.mxu3 %v452_v42  ;;  %v447_v62 = vld [vmem:[#allocation7 + $0xc8] sm:$0xff]  ;;  %v446_v63 = vld [vmem:[#allocation7 + $0xc0] sm:$0xff]  ;;  %p1691_p10 = pnand %p1690_p7, %p1686_p8 }
  0x5b   : > { %332 = vmatpush.msra.mxu0 %v302_v6  ;;  %382 = vmatpush.msra.mxu1 %v357_v14  ;;  %v1477_v0 = vld [vmem:[#allocation8 + $0x2] ss:$0 sm:$0xff]  ;;  %v1478_v5 = vld [vmem:[#allocation8 + $0x7] ss:$0 sm:$0xff]  ;;  %v454_v12 = vld [vmem:[#allocation8 + $0x6] sm:$0x1] }
  0x5c   : > { %433 = vmatpush.msra.mxu2 %v410_v36  ;;  %473 = vmatpush.msra.mxu3 %v451_v43  ;;  %v1385_v14 = vld [vmem:[%s1923_s27] sm:$0xff]  }
  0x5d   : > { %333 = vmatpush.msra.mxu0 %v301_v7  ;;  %383 = vmatpush.msra.mxu1 %v356_v15 }
  0x5e   : > { %1335 = vmatmul.msk.f32.vlgmr.msra.gmra.mxu0 %vm311_vm0, %v293_v8  ;;  %434 = vmatpush.msra.mxu2 %v409_v37 }
  0x5f   : > { %384 = vmatpush.msra.mxu1 %v355_v16  ;;  %474 = vmatpush.msra.mxu3 %v450_v45 }
  0x60   : > { %435 = vmatpush.msra.mxu2 %v408_v38 }
  0x61   : > { %385 = vmatpush.msra.mxu1 %v354_v17  ;;  %475 = vmatpush.msra.mxu3 %v449_v46  ;;  %v1386_v17 = vunpack.c.l.bf16 %v1385_v14 }
  0x62   : > { %436 = vmatpush.msra.mxu2 %v407_v39 }
  0x63   : > { %476 = vmatpush.msra.mxu3 %v448_v49  ;;  %vm1959_vm5 = vcmp.gt.f32.partialorder %v1386_v17, 0.0  ;;  %v650_v17 = vld [vmem:[#allocation7 + $0x100] sm:$0xff] }
  0x64   : > { %437 = vmatpush.msra.mxu2 %v406_v40 }
  0x65   : > { %477 = vmatpush.msra.mxu3 %v447_v62 }
  0x66   : > { %1336 = vmatmul.msk.f32.gmra.mxu0 %vm311_vm0, %v294_v9 }
  0x67   : > { %478 = vmatpush.msra.mxu3 %v446_v63 }
  0xdb   : > { %v335_v19 = vpop.f32.mrf.mxu0 }
  0xdc   : > { %v336_v20 = vadd.f32 %v1475_v18, %v335_v19 }
  0xde   : > { %v343_v21 = vmin.f32 %v336_v20, 0.0  ;;  %vm341_vm1 = vcmp.gt.f32.partialorder %v336_v20, 0.0 }
  0xe0   : > { %v345_v22 = vmul.f32 1.442695, %v343_v21 }
  0xe2   : > { %1493 = vpow2.f32 %v345_v22 }
  0xe3   : > { %v338_v23 = vpop.f32.mrf.mxu0 }
  0xe4   : > { %v339_v24 = vadd.f32 %v1475_v18, %v338_v23 }
  0xe6   : > { %v344_v25 = vmin.f32 %v339_v24, 0.0  ;;  %vm342_vm2 = vcmp.gt.f32.partialorder %v339_v24, 0.0 }
  0xe8   : > { %v1494_v26 = vpop.eup %1493  ;;  %v347_v27 = vmul.f32 1.442695, %v344_v25 }
  0xe9   : > { %v1337_v28 = vadd.f32 -1.0, %v1494_v26 }
  0xea   : > { %1495 = vpow2.f32 %v347_v27 }
  0xeb   : > { %v351_v29 = vsel %vm341_vm1, %v336_v20, %v1337_v28 }
  0xec   : > { %1339 = vmatmul.msk.f32.vlgmr.msra.gmra.mxu1 %vm311_vm0, %v351_v29 }
  0xf0   : > { %v1496_v30 = vpop.eup %1495 }
  0xf1   : > { %v1338_v31 = vadd.f32 -1.0, %v1496_v30 }
  0xf3   : > { %v352_v32 = vsel %vm342_vm2, %v339_v24, %v1338_v31  ;;  %v1387_v24 = vunpack.c.h.bf16 %v1385_v14  ;;  %v653_v14 = vld [vmem:[#allocation7 + $0x118] sm:$0xff] }
  0xf4   : > { %1340 = vmatmul.msk.f32.gmra.mxu1 %vm311_vm0, %v352_v32 }
  0xf5   : > { %vm1966_vm9 = vcmp.gt.f32.partialorder %v1387_v24, 0.0 }
 0x169   : > { %v387_v47 = vpop.f32.mrf.mxu1 }
 0x16a   : > { %v388_v48 = vadd.f32 %v1476_v44, %v387_v47 }
 0x16c   : > { %v395_v50 = vmin.f32 %v388_v48, 0.0  ;;  %vm393_vm3 = vcmp.gt.f32.partialorder %v388_v48, 0.0 }
 0x16e   : > { %v397_v51 = vmul.f32 1.442695, %v395_v50 }
 0x170   : > { %1497 = vpow2.f32 %v397_v51 }
 0x171   : > { %v390_v52 = vpop.f32.mrf.mxu1 }
 0x172   : > { %v391_v53 = vadd.f32 %v1476_v44, %v390_v52 }
 0x174   : > { %v396_v54 = vmin.f32 %v391_v53, 0.0  ;;  %vm394_vm4 = vcmp.gt.f32.partialorder %v391_v53, 0.0 }
 0x176   : > { %v1498_v55 = vpop.eup %1497  ;;  %v399_v56 = vmul.f32 1.442695, %v396_v54 }
 0x177   : > { %v1341_v57 = vadd.f32 -1.0, %v1498_v55 }
 0x178   : > { %1499 = vpow2.f32 %v399_v56 }
 0x179   : > { %v403_v58 = vsel %vm393_vm3, %v388_v48, %v1341_v57  ;;  %v1479_v48 = vld [vmem:[#allocation8 + $0x8] ss:$0 sm:$0xff]  ;;  %v1753_v57 = vmov 64.0  }
 0x17a   : > { %1343 = vmatmul.msk.f32.vlgmr.msra.gmra.mxu2 %vm311_vm0, %v403_v58 }
 0x17e   : > { %v1500_v59 = vpop.eup %1499 }
 0x17f   : > { %v1342_v60 = vadd.f32 -1.0, %v1500_v59 }
 0x181   : > { %v404_v61 = vsel %vm394_vm4, %v391_v53, %v1342_v60 }
 0x182   : > { %1344 = vmatmul.msk.f32.gmra.mxu2 %vm311_vm0, %v404_v61 }
 0x1fd   : > { %v439_v1 = vpop.f32.mrf.mxu2 }
 0x1fe   : > { %v1945_v2 = vadd.f32 %v1477_v0, %v439_v1 }
 0x200   : > { %1345 = vmatmul.msk.f32.vlgmr.msra.gmra.mxu3 %vm311_vm0, %v1945_v2 }
 0x205   : > { %v442_v3 = vpop.f32.mrf.mxu2 }
 0x206   : > { %v1949_v4 = vadd.f32 %v1477_v0, %v442_v3 }
 0x208   : > { %1346 = vmatmul.msk.f32.gmra.mxu3 %vm311_vm0, %v1949_v4 }
 0x283   : > { %v480_v6 = vpop.f32.mrf.mxu3 }
 0x284   : > { %v487_v7 = vmul.f32 %v1478_v5, %v480_v6 }
 0x286   : > { %v489_v8 = vsel %vm311_vm0, %v487_v7, 0.0 }
 0x287   : > { %490 = vadd.xlane.f32.xlu0 %v489_v8 }
 0x28b   : > { %v483_v9 = vpop.f32.mrf.mxu3 }
 0x28c   : > { %1347 = vmatpush.xpose.msk.msrb.mxu0 %vm311_vm0, %v483_v9  ;;  %579 = vmatpush.msrb.mxu1 %v483_v9  ;;  %v488_v10 = vmul.f32 %v1478_v5, %v483_v9 }
 0x28e   : > { %580 = vmatpush.msrb.mxu1 %v480_v6  ;;  %v492_v11 = vsel %vm311_vm0, %v488_v10, 0.0  ;;  %v657_v10 = vld [vmem:[#allocation7 + $0x138] sm:$0xff] }
 0x28f   : > { %493 = vadd.xlane.f32.xlu0 %v492_v11  ;;  %675 = vmatpush.msrb.mxu2 %v657_v10  ;;  %v656_v11 = vld [vmem:[#allocation7 + $0x130] sm:$0xff] }
 0x290   : > { %1348 = vmatpush.xpose.msk.msrb.mxu0 %vm311_vm0, %v480_v6 }
 0x291   : > { %676 = vmatpush.msrb.mxu2 %v656_v11 }
 0x293   : > { %1349 = vmatmul.msk.f32.vlgmr.msrb.gmra.mxu0 %vm311_vm0, %v454_v12  ;;  %v655_v12 = vld [vmem:[#allocation7 + $0x128] sm:$0xff] }
 0x294   : > { %677 = vmatpush.msrb.mxu2 %v655_v12 }
 0x2fa   : > { %v491_v13 = vpop.xlane.xlu0 %490 }
 0x302   : > { %v494_v18 = vpop.xlane.xlu0 %493 }
 0x310   : > { %v521_v15 = vpop.f32.mrf.mxu0 }
 0x311   : > { %v524_v16 = vperm.slane %v521_v15, 0  ;;  %v652_v15 = vld [vmem:[#allocation7 + $0x110] sm:$0xff] }
 0x313   : > { %v525_v19 = vadd.f32 %v524_v16, %v491_v13  ;;  %v526_v20 = vadd.f32 %v524_v16, %v494_v18  ;;  %v654_v13 = vld [vmem:[#allocation7 + $0x120] sm:$0xff]  ;;  %v651_v16 = vld [vmem:[#allocation7 + $0x108] sm:$0xff] }
 0x314   : > { %678 = vmatpush.msrb.mxu2 %v654_v13 }
 0x315   : > { %vm527_vm6 = vcmp.gt.f32.partialorder %v525_v19, 0.0  ;;  %v529_v22 = vmul.f32 0.2, %v525_v19  ;;  %v530_v25 = vmul.f32 0.2, %v526_v20  ;;  %vm528_vm8 = vcmp.gt.f32.partialorder %v526_v20, 0.0 }
 0x316   : > { %679 = vmatpush.msrb.mxu2 %v653_v14 }
 0x317   : > { %v531_v23 = vsel %vm527_vm6, %v525_v19, %v529_v22  ;;  %v532_v29 = vsel %vm528_vm8, %v526_v20, %v530_v25 }
 0x318   : > { %v533_v26 = vsel %vm1959_vm5, %v531_v23, -1e+30  ;;  %v534_v30 = vsel %vm1966_vm9, %v532_v29, -1e+30  ;;  %680 = vmatpush.msrb.mxu2 %v652_v15 }
 0x319   : > { %v536_v27 = vsel %vm535_vm7, %v533_v26, -inf  ;;  %v539_v31 = vsel %vm535_vm7, %v534_v30, -inf }
 0x31a   : > { %537 = vmax.xlane.f32.xlu1 %v536_v27  ;;  %681 = vmatpush.msrb.mxu2 %v651_v16 }
 0x31c   : > { %682 = vmatpush.msrb.mxu2 %v650_v17 }
 0x322   : > { %540 = vmax.xlane.f32.xlu1 %v539_v31 }
 0x38d   : > { %v538_v32 = vpop.xlane.xlu1 %537 }
 0x38e   : > { %v542_v33 = vsub.f32 %v533_v26, %v538_v32 }
 0x390   : > { %v544_v34 = vmul.f32 1.442695, %v542_v33 }
 0x392   : > { %1501 = vpow2.f32 %v544_v34  ;;  %v1480_v34 = vld [vmem:[#allocation8 + $0x9] ss:$0 sm:$0xff] }
 0x395   : > { %v541_v35 = vpop.xlane.xlu1 %540 }
 0x396   : > { %v543_v36 = vsub.f32 %v534_v30, %v541_v35 }
 0x398   : > { %v1502_v37 = vpop.eup %1501  ;;  %v546_v38 = vmul.f32 1.442695, %v543_v36 }
 0x399   : > { %v548_v39 = vsel %vm535_vm7, %v1502_v37, 0.0 }
 0x39a   : > { %1503 = vpow2.f32 %v546_v38  ;;  %549 = vadd.xlane.f32.xlu2 %v548_v39  ;;  %v1481_v38 = vld [vmem:[#allocation8 + $0xa] ss:$0 sm:$0xff] }
 0x3a0   : > { %v1504_v40 = vpop.eup %1503 }
 0x3a1   : > { %v551_v41 = vsel %vm535_vm7, %v1504_v40, 0.0 }
 0x3a2   : > { %552 = vadd.xlane.f32.xlu2 %v551_v41 }
 0x40d   : > { %v550_v42 = vpop.xlane.xlu2 %549 }
 0x40e   : > { %1505 = vrcp.f32 %v550_v42 }
 0x414   : > { %v1506_v43 = vpop.eup %1505 }
 0x415   : > { %v553_v44 = vpop.xlane.xlu2 %552  ;;  %v556_v45 = vmul.f32 %v1506_v43, %v1502_v37 }
 0x416   : > { %1507 = vrcp.f32 %v553_v44 }
 0x417   : > { %1350 = vmatmul.msk.f32.vlgmr.msrb.gmra.mxu1 %vm535_vm7, %v556_v45  ;;  %1509 = vrcp.f32 %v1753_v57 }
 0x41c   : > { %v1508_v46 = vpop.eup %1507 }
 0x41d   : > { %v557_v47 = vmul.f32 %v1508_v46, %v1504_v40  ;;  %v1510_v58 = vpop.eup %1509 }
 0x41e   : > { %v599_v59 = vmul.f32 64.0, %v1510_v58  ;;  %vm603_vm10 = vweird.f32 %v1510_v58 }
 0x41f   : > { %1351 = vmatmul.msk.f32.gmra.mxu1 %vm535_vm7, %v557_v47 }
 0x420   : > { %v600_v60 = vsub.f32 1.0, %v599_v59 }
 0x422   : > { %v601_v61 = vmul.f32 %v1510_v58, %v600_v60 }
 0x424   : > { %v602_v62 = vadd.f32 %v1510_v58, %v601_v61 }
 0x426   : > { %v1981_v63 = vsel %vm603_vm10, %v1510_v58, %v602_v62 }
 0x494   : > { %v582_v49 = vpop.f32.mrf.mxu1 }
 0x495   : > { %v583_v50 = vadd.f32 %v1479_v48, %v582_v49 }
 0x497   : > { %v588_v51 = vadd.f32 %v583_v50, %v1945_v2 }
 0x499   : > { %v592_v52 = vsel %vm311_vm0, %v588_v51, 0.0 }
 0x49a   : > { %593 = vadd.xlane.f32.xlu0 %v592_v52 }
 0x49c   : > { %v585_v53 = vpop.f32.mrf.mxu1 }
 0x49d   : > { %v586_v54 = vadd.f32 %v1479_v48, %v585_v53  ;;  %v1482_v48 = vld [vmem:[#allocation8 + $0xc] ss:$0 sm:$0xff] }
 0x49f   : > { %v589_v55 = vadd.f32 %v586_v54, %v1949_v4 }
 0x4a1   : > { %v595_v56 = vsel %vm311_vm0, %v589_v55, 0.0 }
 0x4a2   : > { %596 = vadd.xlane.f32.xlu1 %v595_v56 }
 0x50d   : > { %v594_v0 = vpop.xlane.xlu0 %593 }
 0x50e   : > { %v605_v1 = vmul.f32 %v1981_v63, %v594_v0 }
 0x510   : > { %v607_v2 = vsub.f32 %v588_v51, %v605_v1 }
 0x512   : > { %v609_v3 = vmul.f32 %v607_v2, %v607_v2 }
 0x514   : > { %v611_v4 = vsel %vm311_vm0, %v609_v3, 0.0 }
 0x515   : > { %v597_v5 = vpop.xlane.xlu1 %596  ;;  %612 = vadd.xlane.f32.xlu2 %v611_v4 }
 0x516   : > { %v606_v6 = vmul.f32 %v1981_v63, %v597_v5 }
 0x518   : > { %v608_v7 = vsub.f32 %v589_v55, %v606_v6  ;;  %v658_v55 = vld [vmem:[#allocation8 + $0xb] sm:$0x1] }
 0x51a   : > { %v610_v8 = vmul.f32 %v608_v7, %v608_v7 }
 0x51c   : > { %v614_v9 = vsel %vm311_vm0, %v610_v8, 0.0 }
 0x51d   : > { %615 = vadd.xlane.f32.xlu0 %v614_v9 }
 0x588   : > { %v613_v18 = vpop.xlane.xlu2 %612 }
 0x589   : > { %v617_v19 = vmul.f32 %v613_v18, %v1981_v63 }
 0x58b   : > { %v619_v20 = vadd.f32 1e-05, %v617_v19 }
 0x58d   : > { %1511 = vrsqrt.f32 %v619_v20  ;;  %vm627_vm12 = vweird.f32 %v619_v20 }
 0x590   : > { %v616_v22 = vpop.xlane.xlu0 %615 }
 0x591   : > { %v618_v23 = vmul.f32 %v616_v22, %v1981_v63 }
 0x593   : > { %v1512_v24 = vpop.eup %1511  ;;  %v620_v25 = vadd.f32 1e-05, %v618_v23 }
 0x594   : > { %v622_v26 = vmul.f32 %v1512_v24, %v619_v20  ;;  %vm628_vm11 = vweird.f32 %v1512_v24 }
 0x595   : > { %1513 = vrsqrt.f32 %v620_v25  ;;  %vm629_vm13 = vmor %vm627_vm12, %vm628_vm11  ;;  %vm637_vm15 = vweird.f32 %v620_v25 }
 0x596   : > { %v623_v27 = vmul.f32 %v1512_v24, %v622_v26 }
 0x598   : > { %v624_v29 = vmul.f32 0.5, %v623_v27 }
 0x59a   : > { %v625_v30 = vsub.f32 1.5, %v624_v29 }
 0x59b   : > { %v1514_v31 = vpop.eup %1513 }
 0x59c   : > { %v626_v32 = vmul.f32 %v1512_v24, %v625_v30  ;;  %v632_v33 = vmul.f32 %v1514_v31, %v620_v25  ;;  %vm638_vm14 = vweird.f32 %v1514_v31 }
 0x59d   : > { %vm639_vm1 = vmor %vm637_vm15, %vm638_vm14 }
 0x59e   : > { %v630_v35 = vsel %vm629_vm13, %v1512_v24, %v626_v32  ;;  %v633_v36 = vmul.f32 %v1514_v31, %v632_v33  ;;  %v1483_v24 = vld [vmem:[#allocation8 + $0xd] ss:$0 sm:$0xff] }
 0x59f   : > { %v641_v37 = vmul.f32 %v630_v35, %v607_v2 }
 0x5a0   : > { %v634_v39 = vmul.f32 0.5, %v633_v36 }
 0x5a1   : > { %v644_v40 = vmul.f32 %v1480_v34, %v641_v37 }
 0x5a2   : > { %v635_v41 = vsub.f32 1.5, %v634_v39 }
 0x5a3   : > { %v1989_v42 = vadd.f32 %v1481_v38, %v644_v40 }
 0x5a4   : > { %v636_v43 = vmul.f32 %v1514_v31, %v635_v41 }
 0x5a5   : > { %1352 = vmatmul.msk.f32.vlgmr.msrb.gmra.mxu2 %vm311_vm0, %v1989_v42 }
 0x5a6   : > { %v640_v44 = vsel %vm639_vm1, %v1514_v31, %v636_v43 }
 0x5a7   : > { %v642_v45 = vmul.f32 %v640_v44, %v608_v7  ;;  %v853_v44 = vld [vmem:[#allocation7 + $0x178] sm:$0xff] }
 0x5a8   : > { %871 = vmatpush.msra.mxu1 %v853_v44 }
 0x5a9   : > { %v645_v46 = vmul.f32 %v1480_v34, %v642_v45  ;;  %v852_v45 = vld [vmem:[#allocation7 + $0x170] sm:$0xff] }
 0x5aa   : > { %872 = vmatpush.msra.mxu1 %v852_v45 }
 0x5ab   : > { %v1993_v47 = vadd.f32 %v1481_v38, %v645_v46  ;;  %v851_v46 = vld [vmem:[#allocation7 + $0x168] sm:$0xff] }
 0x5ac   : > { %873 = vmatpush.msra.mxu1 %v851_v46 }
 0x5ad   : > { %1353 = vmatmul.msk.f32.gmra.mxu2 %vm311_vm0, %v1993_v47 }
 0x628   : > { %v684_v49 = vpop.f32.mrf.mxu2 }
 0x629   : > { %v691_v50 = vmul.f32 %v1482_v48, %v684_v49 }
 0x62b   : > { %v693_v51 = vsel %vm311_vm0, %v691_v50, 0.0  ;;  %v847_v50 = vld [vmem:[#allocation7 + $0x148] sm:$0xff] }
 0x62c   : > { %694 = vadd.xlane.f32.xlu1 %v693_v51  ;;  %v846_v51 = vld [vmem:[#allocation7 + $0x140] sm:$0xff] }
 0x630   : > { %v687_v52 = vpop.f32.mrf.mxu2 }
 0x631   : > { %1354 = vmatpush.xpose.msk.msrb.mxu3 %vm311_vm0, %v687_v52  ;;  %782 = vmatpush.msra.mxu0 %v687_v52  ;;  %v692_v53 = vmul.f32 %v1482_v48, %v687_v52  ;;  %v849_v48 = vld [vmem:[#allocation7 + $0x158] sm:$0xff] }
 0x633   : > { %783 = vmatpush.msra.mxu0 %v684_v49  ;;  %v696_v54 = vsel %vm311_vm0, %v692_v53, 0.0 }
 0x634   : > { %697 = vadd.xlane.f32.xlu2 %v696_v54 }
 0x635   : > { %1355 = vmatpush.xpose.msk.msrb.mxu3 %vm311_vm0, %v684_v49  ;;  %v848_v49 = vld [vmem:[#allocation7 + $0x150] sm:$0xff] }
 0x638   : > { %1356 = vmatmul.msk.f32.vlgmr.msrb.gmra.mxu3 %vm311_vm0, %v658_v55 }
 0x69f   : > { %v695_v58 = vpop.xlane.xlu1 %694 }
 0x6a7   : > { %v698_v59 = vpop.xlane.xlu2 %697 }
 0x6bb   : > { %v725_v56 = vpop.f32.mrf.mxu3 }
 0x6bc   : > { %v728_v57 = vperm.slane %v725_v56, 0 }
 0x6be   : > { %v729_v60 = vadd.f32 %v728_v57, %v695_v58  ;;  %v730_v61 = vadd.f32 %v728_v57, %v698_v59 }
 0x6c0   : > { %vm731_vm2 = vcmp.gt.f32.partialorder %v729_v60, 0.0  ;;  %v733_v62 = vmul.f32 0.2, %v729_v60  ;;  %vm732_vm3 = vcmp.gt.f32.partialorder %v730_v61, 0.0  ;;  %v734_v0 = vmul.f32 0.2, %v730_v61 }
 0x6c2   : > { %v735_v1 = vsel %vm731_vm2, %v729_v60, %v733_v62  ;;  %v736_v2 = vsel %vm732_vm3, %v730_v61, %v734_v0 }
 0x6c3   : > { %v737_v3 = vsel %vm1959_vm5, %v735_v1, -1e+30  ;;  %v738_v4 = vsel %vm1966_vm9, %v736_v2, -1e+30 }
 0x6c4   : > { %v739_v5 = vsel %vm535_vm7, %v737_v3, -inf  ;;  %v742_v6 = vsel %vm535_vm7, %v738_v4, -inf }
 0x6c5   : > { %740 = vmax.xlane.f32.xlu0 %v739_v5  ;;  %743 = vmax.xlane.f32.xlu1 %v742_v6 }
 0x738   : > { %v741_v7 = vpop.xlane.xlu0 %740  ;;  %v744_v8 = vpop.xlane.xlu1 %743 }
 0x739   : > { %v745_v9 = vsub.f32 %v737_v3, %v741_v7  ;;  %v746_v10 = vsub.f32 %v738_v4, %v744_v8  ;;  %v1484_v3 = vld [vmem:[#allocation8 + $0xe] ss:$0 sm:$0xff]  ;;  %v1485_v7 = vld [vmem:[#allocation8 + $0xf] ss:$0 sm:$0xff] }
 0x73b   : > { %v747_v11 = vmul.f32 1.442695, %v745_v9  ;;  %v749_v12 = vmul.f32 1.442695, %v746_v10 }
 0x73d   : > { %1515 = vpow2.f32 %v747_v11 }
 0x73e   : > { %1517 = vpow2.f32 %v749_v12 }
 0x743   : > { %v1516_v13 = vpop.eup %1515 }
 0x744   : > { %v1518_v14 = vpop.eup %1517  ;;  %v751_v15 = vsel %vm535_vm7, %v1516_v13, 0.0 }
 0x745   : > { %752 = vadd.xlane.f32.xlu2 %v751_v15  ;;  %v754_v16 = vsel %vm535_vm7, %v1518_v14, 0.0 }
 0x746   : > { %755 = vadd.xlane.f32.xlu0 %v754_v16 }
 0x7b8   : > { %v753_v17 = vpop.xlane.xlu2 %752 }
 0x7b9   : > { %1519 = vrcp.f32 %v753_v17  ;;  %v756_v18 = vpop.xlane.xlu0 %755  ;;  %v1486_v17 = vld [vmem:[#allocation8 + $0x11] ss:$0 sm:$0xff] }
 0x7ba   : > { %1521 = vrcp.f32 %v756_v18 }
 0x7bf   : > { %v1520_v19 = vpop.eup %1519 }
 0x7c0   : > { %v759_v20 = vmul.f32 %v1520_v19, %v1516_v13  ;;  %v1522_v22 = vpop.eup %1521 }
 0x7c1   : > { %v760_v23 = vmul.f32 %v1522_v22, %v1518_v14 }
 0x7c2   : > { %1357 = vmatmul.msk.f32.vlgmr.msra.gmra.mxu0 %vm535_vm7, %v759_v20 }
 0x7ca   : > { %1358 = vmatmul.msk.f32.gmra.mxu0 %vm535_vm7, %v760_v23 }
 0x83f   : > { %v785_v25 = vpop.f32.mrf.mxu0 }
 0x840   : > { %v786_v26 = vadd.f32 %v1483_v24, %v785_v25  ;;  %v854_v25 = vld [vmem:[#allocation8 + $0x10] sm:$0x1] }
 0x842   : > { %v791_v27 = vadd.f32 %v786_v26, %v1989_v42 }
 0x844   : > { %v795_v29 = vsel %vm311_vm0, %v791_v27, 0.0 }
 0x845   : > { %796 = vadd.xlane.f32.xlu1 %v795_v29 }
 0x847   : > { %v788_v30 = vpop.f32.mrf.mxu0 }
 0x848   : > { %v789_v31 = vadd.f32 %v1483_v24, %v788_v30 }
 0x84a   : > { %v792_v32 = vadd.f32 %v789_v31, %v1993_v47  ;;  %v850_v47 = vld [vmem:[#allocation7 + $0x160] sm:$0xff] }
 0x84b   : > { %874 = vmatpush.msra.mxu1 %v850_v47 }
 0x84c   : > { %v798_v33 = vsel %vm311_vm0, %v792_v32, 0.0 }
 0x84d   : > { %799 = vadd.xlane.f32.xlu2 %v798_v33  ;;  %875 = vmatpush.msra.mxu1 %v849_v48 }
 0x84f   : > { %876 = vmatpush.msra.mxu1 %v848_v49 }
 0x851   : > { %877 = vmatpush.msra.mxu1 %v847_v50 }
 0x853   : > { %878 = vmatpush.msra.mxu1 %v846_v51 }
 0x8b8   : > { %v797_v34 = vpop.xlane.xlu1 %796 }
 0x8b9   : > { %v801_v35 = vmul.f32 %v797_v34, %v1981_v63 }
 0x8bb   : > { %v803_v36 = vsub.f32 %v791_v27, %v801_v35 }
 0x8bd   : > { %v805_v37 = vmul.f32 %v803_v36, %v803_v36 }
 0x8bf   : > { %v807_v38 = vsel %vm311_vm0, %v805_v37, 0.0 }
 0x8c0   : > { %v800_v39 = vpop.xlane.xlu2 %799  ;;  %808 = vadd.xlane.f32.xlu0 %v807_v38 }
 0x8c1   : > { %v802_v40 = vmul.f32 %v800_v39, %v1981_v63 }
 0x8c3   : > { %v804_v41 = vsub.f32 %v792_v32, %v802_v40 }
 0x8c5   : > { %v806_v42 = vmul.f32 %v804_v41, %v804_v41 }
 0x8c7   : > { %v810_v43 = vsel %vm311_vm0, %v806_v42, 0.0 }
 0x8c8   : > { %811 = vadd.xlane.f32.xlu1 %v810_v43 }
 0x933   : > { %v809_v52 = vpop.xlane.xlu0 %808 }
 0x934   : > { %v813_v53 = vmul.f32 %v809_v52, %v1981_v63 }
 0x936   : > { %v815_v54 = vadd.f32 1e-05, %v813_v53 }
 0x938   : > { %1523 = vrsqrt.f32 %v815_v54  ;;  %vm823_vm6 = vweird.f32 %v815_v54 }
 0x93b   : > { %v812_v55 = vpop.xlane.xlu1 %811 }
 0x93c   : > { %v814_v56 = vmul.f32 %v812_v55, %v1981_v63  ;;  %v1487_v55 = vld [vmem:[#allocation8 + $0x12] ss:$0 sm:$0xff] }
 0x93e   : > { %v1524_v57 = vpop.eup %1523  ;;  %v816_v58 = vadd.f32 1e-05, %v814_v56 }
 0x93f   : > { %v818_v59 = vmul.f32 %v1524_v57, %v815_v54  ;;  %vm824_vm4 = vweird.f32 %v1524_v57 }
 0x940   : > { %1525 = vrsqrt.f32 %v816_v58  ;;  %vm825_vm8 = vmor %vm823_vm6, %vm824_vm4  ;;  %vm833_vm11 = vweird.f32 %v816_v58 }
 0x941   : > { %v819_v60 = vmul.f32 %v1524_v57, %v818_v59 }
 0x943   : > { %v820_v61 = vmul.f32 0.5, %v819_v60 }
 0x945   : > { %v821_v62 = vsub.f32 1.5, %v820_v61 }
 0x946   : > { %v1526_v0 = vpop.eup %1525 }
 0x947   : > { %v822_v1 = vmul.f32 %v1524_v57, %v821_v62  ;;  %v828_v2 = vmul.f32 %v1526_v0, %v816_v58  ;;  %vm834_vm10 = vweird.f32 %v1526_v0 }
 0x948   : > { %vm835_vm12 = vmor %vm833_vm11, %vm834_vm10 }
 0x949   : > { %v826_v4 = vsel %vm825_vm8, %v1524_v57, %v822_v1  ;;  %v829_v5 = vmul.f32 %v1526_v0, %v828_v2 }
 0x94a   : > { %v837_v6 = vmul.f32 %v826_v4, %v803_v36 }
 0x94b   : > { %v830_v8 = vmul.f32 0.5, %v829_v5 }
 0x94c   : > { %v840_v9 = vmul.f32 %v1484_v3, %v837_v6 }
 0x94d   : > { %v831_v10 = vsub.f32 1.5, %v830_v8 }
 0x94e   : > { %v2022_v11 = vadd.f32 %v1485_v7, %v840_v9 }
 0x94f   : > { %v832_v12 = vmul.f32 %v1526_v0, %v831_v10 }
 0x950   : > { %1359 = vmatmul.msk.f32.vlgmr.msra.gmra.mxu1 %vm311_vm0, %v2022_v11 }
 0x951   : > { %v836_v13 = vsel %vm835_vm12, %v1526_v0, %v832_v12  ;;  %v1048_v12 = vld [vmem:[#allocation7 + $0x1b0] sm:$0xff] }
 0x952   : > { %v838_v14 = vmul.f32 %v836_v13, %v804_v41  ;;  %v1047_v13 = vld [vmem:[#allocation7 + $0x1a8] sm:$0xff] }
 0x954   : > { %v841_v15 = vmul.f32 %v1484_v3, %v838_v14  ;;  %v1046_v14 = vld [vmem:[#allocation7 + $0x1a0] sm:$0xff] }
 0x956   : > { %v2026_v16 = vadd.f32 %v1485_v7, %v841_v15  ;;  %v1045_v15 = vld [vmem:[#allocation7 + $0x198] sm:$0xff] }
 0x958   : > { %1360 = vmatmul.msk.f32.gmra.mxu1 %vm311_vm0, %v2026_v16 }
 0x9cd   : > { %v880_v18 = vpop.f32.mrf.mxu1 }
 0x9ce   : > { %v887_v19 = vmul.f32 %v1486_v17, %v880_v18 }
 0x9d0   : > { %v889_v20 = vsel %vm311_vm0, %v887_v19, 0.0 }
 0x9d1   : > { %890 = vadd.xlane.f32.xlu2 %v889_v20 }
 0x9d5   : > { %v883_v22 = vpop.f32.mrf.mxu1 }
 0x9d6   : > { %1361 = vmatpush.xpose.msk.msra.mxu3 %vm311_vm0, %v883_v22  ;;  %978 = vmatpush.msra.mxu2 %v883_v22  ;;  %v888_v23 = vmul.f32 %v1486_v17, %v883_v22  ;;  %v1043_v17 = vld [vmem:[#allocation7 + $0x188] sm:$0xff] }
 0x9d8   : > { %979 = vmatpush.msra.mxu2 %v880_v18  ;;  %v892_v24 = vsel %vm311_vm0, %v888_v23, 0.0 }
 0x9d9   : > { %893 = vadd.xlane.f32.xlu0 %v892_v24 }
 0x9da   : > { %1362 = vmatpush.xpose.msk.msra.mxu3 %vm311_vm0, %v880_v18  ;;  %v1042_v18 = vld [vmem:[#allocation7 + $0x180] sm:$0xff] }
 0x9dd   : > { %1363 = vmatmul.msk.f32.vlgmr.msra.gmra.mxu3 %vm311_vm0, %v854_v25 }
 0xa44   : > { %v891_v29 = vpop.xlane.xlu2 %890 }
 0xa4c   : > { %v894_v30 = vpop.xlane.xlu0 %893 }
 0xa60   : > { %v921_v26 = vpop.f32.mrf.mxu3 }
 0xa61   : > { %v924_v27 = vperm.slane %v921_v26, 0 }
 0xa63   : > { %v925_v31 = vadd.f32 %v924_v27, %v891_v29  ;;  %v926_v32 = vadd.f32 %v924_v27, %v894_v30 }
 0xa65   : > { %vm927_vm13 = vcmp.gt.f32.partialorder %v925_v31, 0.0  ;;  %v929_v33 = vmul.f32 0.2, %v925_v31  ;;  %vm928_vm14 = vcmp.gt.f32.partialorder %v926_v32, 0.0  ;;  %v930_v34 = vmul.f32 0.2, %v926_v32 }
 0xa67   : > { %v931_v35 = vsel %vm927_vm13, %v925_v31, %v929_v33  ;;  %v932_v36 = vsel %vm928_vm14, %v926_v32, %v930_v34 }
 0xa68   : > { %v933_v37 = vsel %vm1959_vm5, %v931_v35, -1e+30  ;;  %v934_v38 = vsel %vm1966_vm9, %v932_v36, -1e+30  ;;  %v1488_v35 = vld [vmem:[#allocation8 + $0x13] ss:$0 sm:$0xff] }
 0xa69   : > { %v935_v39 = vsel %vm535_vm7, %v933_v37, -inf  ;;  %v938_v40 = vsel %vm535_vm7, %v934_v38, -inf }
 0xa6a   : > { %936 = vmax.xlane.f32.xlu1 %v935_v39  ;;  %939 = vmax.xlane.f32.xlu2 %v938_v40  ;;  %v1489_v39 = vld [vmem:[#allocation8 + $0x14] ss:$0 sm:$0xff] }
 0xadd   : > { %v937_v41 = vpop.xlane.xlu1 %936  ;;  %v940_v42 = vpop.xlane.xlu2 %939 }
 0xade   : > { %v941_v43 = vsub.f32 %v933_v37, %v937_v41  ;;  %v942_v44 = vsub.f32 %v934_v38, %v940_v42 }
 0xae0   : > { %v943_v45 = vmul.f32 1.442695, %v941_v43  ;;  %v945_v46 = vmul.f32 1.442695, %v942_v44 }
 0xae2   : > { %1527 = vpow2.f32 %v943_v45 }
 0xae3   : > { %1529 = vpow2.f32 %v945_v46 }
 0xae8   : > { %v1528_v47 = vpop.eup %1527 }
 0xae9   : > { %v1530_v21 = vpop.eup %1529  ;;  %v947_v48 = vsel %vm535_vm7, %v1528_v47, 0.0 }
 0xaea   : > { %948 = vadd.xlane.f32.xlu0 %v947_v48  ;;  %v950_v28 = vsel %vm535_vm7, %v1530_v21, 0.0  ;;  %v1100_v48 = vld [vmem:[#allocation7 + $0x1f0] sm:$0xff] }
 0xaeb   : > { %951 = vadd.xlane.f32.xlu1 %v950_v28  ;;  %v1099_v28 = vld [vmem:[#allocation7 + $0x1e8] sm:$0xff] }
 0xb5d   : > { %v949_v49 = vpop.xlane.xlu0 %948 }
 0xb5e   : > { %1531 = vrcp.f32 %v949_v49  ;;  %v952_v50 = vpop.xlane.xlu1 %951  ;;  %v1098_v49 = vld [vmem:[#allocation7 + $0x1e0] sm:$0xff] }
 0xb5f   : > { %1533 = vrcp.f32 %v952_v50  ;;  %v1097_v50 = vld [vmem:[#allocation7 + $0x1d8] sm:$0xff] }
 0xb64   : > { %v1532_v51 = vpop.eup %1531 }
 0xb65   : > { %v955_v52 = vmul.f32 %v1532_v51, %v1528_v47  ;;  %v1534_v53 = vpop.eup %1533  ;;  %v1096_v51 = vld [vmem:[#allocation7 + $0x1d0] sm:$0xff] }
 0xb66   : > { %v956_v54 = vmul.f32 %v1534_v53, %v1530_v21  ;;  %v1101_v21 = vld [vmem:[#allocation7 + $0x1f8] sm:$0xff]  ;;  %v1094_v53 = vld [vmem:[#allocation7 + $0x1c0] sm:$0xff] }
 0xb67   : > { %1364 = vmatmul.msk.f32.vlgmr.msra.gmra.mxu2 %vm535_vm7, %v955_v52  ;;  %1118 = vmatpush.msrb.mxu3 %v1101_v21  ;;  %v1095_v52 = vld [vmem:[#allocation7 + $0x1c8] sm:$0xff] }
 0xb69   : > { %1119 = vmatpush.msrb.mxu3 %v1100_v48 }
 0xb6b   : > { %1120 = vmatpush.msrb.mxu3 %v1099_v28 }
 0xb6d   : > { %1121 = vmatpush.msrb.mxu3 %v1098_v49 }
 0xb6f   : > { %1365 = vmatmul.msk.f32.gmra.mxu2 %vm535_vm7, %v956_v54  ;;  %1122 = vmatpush.msrb.mxu3 %v1097_v50  ;;  %v1490_v54 = vld [vmem:[#allocation8 + $0x3] ss:$0 sm:$0xff] }
 0xb71   : > { %1123 = vmatpush.msrb.mxu3 %v1096_v51 }
 0xb73   : > { %1124 = vmatpush.msrb.mxu3 %v1095_v52 }
 0xb75   : > { %1125 = vmatpush.msrb.mxu3 %v1094_v53 }
 0xbea   : > { %v981_v56 = vpop.f32.mrf.mxu2 }
 0xbeb   : > { %v982_v57 = vadd.f32 %v1487_v55, %v981_v56 }
 0xbed   : > { %v987_v58 = vadd.f32 %v982_v57, %v2022_v11  ;;  %v1049_v11 = vld [vmem:[#allocation7 + $0x1b8] sm:$0xff] }
 0xbee   : > { %1066 = vmatpush.msrb.mxu0 %v1049_v11  ;;  %v1148_v11 = vld [vmem:[#allocation7 + $0x210] sm:$0xff] }
 0xbef   : > { %v991_v59 = vsel %vm311_vm0, %v987_v58, 0.0 }
 0xbf0   : > { %992 = vadd.xlane.f32.xlu2 %v991_v59  ;;  %1067 = vmatpush.msrb.mxu0 %v1048_v12  ;;  %v1147_v12 = vld [vmem:[#allocation7 + $0x208] sm:$0xff] }
 0xbf2   : > { %v984_v60 = vpop.f32.mrf.mxu2  ;;  %1068 = vmatpush.msrb.mxu0 %v1047_v13  ;;  %v1146_v13 = vld [vmem:[#allocation7 + $0x200] sm:$0xff] }
 0xbf3   : > { %v985_v61 = vadd.f32 %v1487_v55, %v984_v60 }
 0xbf4   : > { %1069 = vmatpush.msrb.mxu0 %v1046_v14  ;;  %v1491_v14 = vld [vmem:[#allocation8 + $0x4] ss:$0 sm:$0xff] }
 0xbf5   : > { %v988_v62 = vadd.f32 %v985_v61, %v2026_v16  ;;  %v1044_v16 = vld [vmem:[#allocation7 + $0x190] sm:$0xff] }
 0xbf6   : > { %1070 = vmatpush.msrb.mxu0 %v1045_v15 }
 0xbf7   : > { %v994_v0 = vsel %vm311_vm0, %v988_v62, 0.0 }
 0xbf8   : > { %995 = vadd.xlane.f32.xlu0 %v994_v0  ;;  %1071 = vmatpush.msrb.mxu0 %v1044_v16 }
 0xbfa   : > { %1072 = vmatpush.msrb.mxu0 %v1043_v17 }
 0xbfc   : > { %1073 = vmatpush.msrb.mxu0 %v1042_v18 }
 0xc63   : > { %v993_v1 = vpop.xlane.xlu2 %992 }
 0xc64   : > { %v997_v2 = vmul.f32 %v993_v1, %v1981_v63 }
 0xc66   : > { %v999_v3 = vsub.f32 %v987_v58, %v997_v2 }
 0xc68   : > { %v1001_v4 = vmul.f32 %v999_v3, %v999_v3 }
 0xc6a   : > { %v1003_v5 = vsel %vm311_vm0, %v1001_v4, 0.0 }
 0xc6b   : > { %v996_v6 = vpop.xlane.xlu0 %995  ;;  %1004 = vadd.xlane.f32.xlu1 %v1003_v5 }
 0xc6c   : > { %v998_v7 = vmul.f32 %v996_v6, %v1981_v63  ;;  %v1153_v6 = vld [vmem:[#allocation7 + $0x238] sm:$0xff] }
 0xc6d   : > { %1170 = vmatpush.msrb.mxu1 %v1153_v6  ;;  %1388 = vmatpush.msrb.mxu2 %v1153_v6 }
 0xc6e   : > { %v1000_v8 = vsub.f32 %v988_v62, %v998_v7  ;;  %v1152_v7 = vld [vmem:[#allocation7 + $0x230] sm:$0xff] }
 0xc6f   : > { %1171 = vmatpush.msrb.mxu1 %v1152_v7  ;;  %1389 = vmatpush.msrb.mxu2 %v1152_v7 }
 0xc70   : > { %v1002_v9 = vmul.f32 %v1000_v8, %v1000_v8 }
 0xc72   : > { %v1006_v10 = vsel %vm311_vm0, %v1002_v9, 0.0  ;;  %v1150_v9 = vld [vmem:[#allocation7 + $0x220] sm:$0xff] }
 0xc73   : > { %1007 = vadd.xlane.f32.xlu2 %v1006_v10  ;;  %v1149_v10 = vld [vmem:[#allocation7 + $0x218] sm:$0xff] }
 0xcde   : > { %v1005_v19 = vpop.xlane.xlu1 %1004 }
 0xcdf   : > { %v1009_v20 = vmul.f32 %v1005_v19, %v1981_v63 }
 0xce1   : > { %v1011_v22 = vadd.f32 1e-05, %v1009_v20 }
 0xce3   : > { %1535 = vrsqrt.f32 %v1011_v22  ;;  %vm1019_vm7 = vweird.f32 %v1011_v22 }
 0xce6   : > { %v1008_v23 = vpop.xlane.xlu2 %1007 }
 0xce7   : > { %v1010_v24 = vmul.f32 %v1008_v23, %v1981_v63 }
 0xce9   : > { %v1536_v25 = vpop.eup %1535  ;;  %v1012_v26 = vadd.f32 1e-05, %v1010_v24 }
 0xcea   : > { %v1014_v27 = vmul.f32 %v1536_v25, %v1011_v22  ;;  %vm1020_vm5 = vweird.f32 %v1536_v25 }
 0xceb   : > { %1537 = vrsqrt.f32 %v1012_v26  ;;  %vm1021_vm9 = vmor %vm1019_vm7, %vm1020_vm5  ;;  %vm1029_vm1 = vweird.f32 %v1012_v26 }
 0xcec   : > { %v1015_v29 = vmul.f32 %v1536_v25, %v1014_v27 }
 0xcee   : > { %v1016_v30 = vmul.f32 0.5, %v1015_v29 }
 0xcf0   : > { %v1017_v31 = vsub.f32 1.5, %v1016_v30 }
 0xcf1   : > { %v1538_v32 = vpop.eup %1537 }
 0xcf2   : > { %v1018_v33 = vmul.f32 %v1536_v25, %v1017_v31  ;;  %v1024_v34 = vmul.f32 %v1538_v32, %v1012_v26  ;;  %vm1030_vm15 = vweird.f32 %v1538_v32  ;;  %v1492_v31 = vld [vmem:[#allocation8 + $0x5] ss:$0 sm:$0xff] }
 0xcf3   : > { %vm1031_vm2 = vmor %vm1029_vm1, %vm1030_vm15 }
 0xcf4   : > { %v1022_v36 = vsel %vm1021_vm9, %v1536_v25, %v1018_v33  ;;  %v1025_v37 = vmul.f32 %v1538_v32, %v1024_v34 }
 0xcf5   : > { %v1033_v38 = vmul.f32 %v1022_v36, %v999_v3 }
 0xcf6   : > { %v1026_v40 = vmul.f32 0.5, %v1025_v37 }
 0xcf7   : > { %v1036_v63 = vmul.f32 %v1488_v35, %v1033_v38 }
 0xcf8   : > { %v1027_v41 = vsub.f32 1.5, %v1026_v40 }
 0xcf9   : > { %v1039_v42 = vadd.f32 %v1489_v39, %v1036_v63 }
 0xcfa   : > { %v1028_v43 = vmul.f32 %v1538_v32, %v1027_v41 }
 0xcfb   : > { %1366 = vmatmul.msk.f32.vlgmr.msrb.gmra.mxu0 %vm311_vm0, %v1039_v42 }
 0xcfc   : > { %v1032_v44 = vsel %vm1031_vm2, %v1538_v32, %v1028_v43 }
 0xcfd   : > { %v1034_v45 = vmul.f32 %v1032_v44, %v1000_v8  ;;  %v1151_v8 = vld [vmem:[#allocation7 + $0x228] sm:$0xff] }
 0xcfe   : > { %1172 = vmatpush.msrb.mxu1 %v1151_v8  ;;  %1390 = vmatpush.msrb.mxu2 %v1151_v8 }
 0xcff   : > { %v1037_v46 = vmul.f32 %v1488_v35, %v1034_v45 }
 0xd00   : > { %1173 = vmatpush.msrb.mxu1 %v1150_v9  ;;  %1391 = vmatpush.msrb.mxu2 %v1150_v9 }
 0xd01   : > { %v1040_v47 = vadd.f32 %v1489_v39, %v1037_v46 }
 0xd02   : > { %1174 = vmatpush.msrb.mxu1 %v1149_v10  ;;  %1392 = vmatpush.msrb.mxu2 %v1149_v10 }
 0xd03   : > { %1367 = vmatmul.msk.f32.gmra.mxu0 %vm311_vm0, %v1040_v47 }
 0xd04   : > { %1175 = vmatpush.msrb.mxu1 %v1148_v11  ;;  %1393 = vmatpush.msrb.mxu2 %v1148_v11 }
 0xd06   : > { %1176 = vmatpush.msrb.mxu1 %v1147_v12  ;;  %1394 = vmatpush.msrb.mxu2 %v1147_v12 }
 0xd08   : > { %1177 = vmatpush.msrb.mxu1 %v1146_v13  ;;  %1395 = vmatpush.msrb.mxu2 %v1146_v13 }
 0xd78   : > { %v1075_v55 = vpop.f32.mrf.mxu0 }
 0xd79   : > { %v1076_v56 = vadd.f32 %v1490_v54, %v1075_v55 }
 0xd7b   : > { %v1083_v57 = vmin.f32 %v1076_v56, 0.0  ;;  %vm1081_vm3 = vcmp.gt.f32.partialorder %v1076_v56, 0.0 }
 0xd7d   : > { %v1085_v58 = vmul.f32 1.442695, %v1083_v57 }
 0xd7f   : > { %1539 = vpow2.f32 %v1085_v58 }
 0xd80   : > { %v1078_v59 = vpop.f32.mrf.mxu0 }
 0xd81   : > { %v1079_v60 = vadd.f32 %v1490_v54, %v1078_v59 }
 0xd83   : > { %v1084_v61 = vmin.f32 %v1079_v60, 0.0  ;;  %vm1082_vm4 = vcmp.gt.f32.partialorder %v1079_v60, 0.0 }
 0xd85   : > { %v1540_v62 = vpop.eup %1539  ;;  %v1087_v0 = vmul.f32 1.442695, %v1084_v61 }
 0xd86   : > { %v1368_v1 = vadd.f32 -1.0, %v1540_v62 }
 0xd87   : > { %1541 = vpow2.f32 %v1087_v0 }
 0xd88   : > { %v1091_v2 = vsel %vm1081_vm3, %v1076_v56, %v1368_v1 }
 0xd89   : > { %1370 = vmatmul.msk.f32.vlgmr.msrb.gmra.mxu3 %vm311_vm0, %v1091_v2 }
 0xd8d   : > { %v1542_v3 = vpop.eup %1541 }
 0xd8e   : > { %v1369_v4 = vadd.f32 -1.0, %v1542_v3 }
 0xd90   : > { %v1092_v5 = vsel %vm1082_vm4, %v1079_v60, %v1369_v4 }
 0xd91   : > { %1371 = vmatmul.msk.f32.gmra.mxu3 %vm311_vm0, %v1092_v5 }
 0xe0c   : > { %v1127_v15 = vpop.f32.mrf.mxu3 }
 0xe0d   : > { %v1128_v16 = vadd.f32 %v1491_v14, %v1127_v15 }
 0xe0f   : > { %v1135_v17 = vmin.f32 %v1128_v16, 0.0  ;;  %vm1133_vm6 = vcmp.gt.f32.partialorder %v1128_v16, 0.0 }
 0xe11   : > { %v1137_v18 = vmul.f32 1.442695, %v1135_v17 }
 0xe13   : > { %1543 = vpow2.f32 %v1137_v18 }
 0xe14   : > { %v1130_v19 = vpop.f32.mrf.mxu3 }
 0xe15   : > { %v1131_v20 = vadd.f32 %v1491_v14, %v1130_v19 }
 0xe17   : > { %v1136_v22 = vmin.f32 %v1131_v20, 0.0  ;;  %vm1134_vm8 = vcmp.gt.f32.partialorder %v1131_v20, 0.0 }
 0xe19   : > { %v1544_v23 = vpop.eup %1543  ;;  %v1139_v24 = vmul.f32 1.442695, %v1136_v22 }
 0xe1a   : > { %v1372_v25 = vadd.f32 -1.0, %v1544_v23 }
 0xe1b   : > { %1545 = vpow2.f32 %v1139_v24 }
 0xe1c   : > { %v1143_v26 = vsel %vm1133_vm6, %v1128_v16, %v1372_v25 }
 0xe1d   : > { %1374 = vmatmul.msk.f32.vlgmr.msrb.gmra.mxu1 %vm311_vm0, %v1143_v26 }
 0xe21   : > { %v1546_v27 = vpop.eup %1545 }
 0xe22   : > { %v1373_v29 = vadd.f32 -1.0, %v1546_v27 }
 0xe24   : > { %v1144_v30 = vsel %vm1134_vm8, %v1131_v20, %v1373_v29 }
 0xe25   : > { %1375 = vmatmul.msk.f32.vlgmr.msrb.gmra.mxu2 %vm311_vm0, %v1144_v30 }
 0xe9a   : > { %v1179_v32 = vpop.f32.mrf.mxu1 }
 0xe9b   : > { %v1180_v33 = vadd.f32 %v1492_v31, %v1179_v32 }
 0xe9d   : > { %1185 = vst.msk [vmem:[%s292_s21] sm:$0xff] %vm311_vm0, %v1180_v33 }
 0xea8   : > { %v1182_v34 = vpop.f32.mrf.mxu2 }
 0xea9   : > { %v1183_v35 = vadd.f32 %v1492_v31, %v1182_v34 }
 0xeab   : > { %1186 = vst.msk [vmem:[%s292_s21 + $0x8] sm:$0xff] %vm311_vm0, %v1183_v35 }
 0xeac   : > { %1694 = shalt.err (!%p1691_p10)
}
 0xead   : > { %s1754_s11 = smov 128   ;;  %s1755_s23 = smov 8  }
 0xeae   : > { %1408 = dma.vmem_to_hbm [thread:$0]  (%p1852_p0), %s1201_s30, 256, %s1203_s5, %s1188_s12, %s1754_s11, %s1754_s11, %s1755_s23  }
 0xeaf PF: > { %p1433_p11 = scmp.ge.s32.totalorder %s1745_s18, 2  ;;  %s1217_s26 = sand.u32 1, %s1733_s15  }
 0xeb0   : > { %s1218_s8 = scalar_lea.sflag [#allocation4], %s1217_s26 }
 0xeb1   : > { %p1425_p12 = pnand %p1433_p11, %p1816_p6 }
 0xeb3   : > { %p1426_p13 = pneg %p1425_p12 }
 0xeb5   : > { %1728 = dma.done.wait (%p1426_p13), %s1218_s8, 256  }
 0xeb6   : > { %1730 = vsyncadd (%p1426_p13), %s1218_s8, 4294967040  ;;  %s2120_s24 = sld [smem:[#allocation16_spill]]  ;;  %p21_p3 = scmp.ge.s32.totalorder %s1842_s10, 6  }
 0xeb7   : > { %s2121_s15 = smov %s1737_s16  ;;  %s2122_s16 = smov %s1741_s17 }
 0xeb8   : > { %s2124_s18 = smov %s1842_s10  ;;  %23 = sbr.rel (!%p21_p3) target bundleno = 11 (0xb), region = 110 }
 0xebc   : > { %s2123_s17 = smov %s2120_s24 }
 0xebd   :  { %1224 = vsyncpa [#allocation3], 1 }
 0xebe   :  { %1226 = vsyncpa [#allocation3 + $0x1], 1 }
 0xebf   :  { %1227 = vsyncpa [#allocation6], 1 }
 0xec0   :  { %1229 = vsyncpa [#allocation6 + $0x1], 1 }
 0xec1   :  { %1230 = vsyncpa [#allocation9], 1 }
 0xec2   :  { %1231 = vsyncpa [#allocation4], 1 }
 0xec3   :  { %1233 = vsyncpa [#allocation4 + $0x1], 1 }

</bundles_post_ra>
